<compile_context>
chip_gen: v7x
topology: tpu7x:2x2x1
jax: 0.10.0
libtpu: 0.0.40
codegen_flags: <defaults>
</compile_context>

<pallas_src>
import jax
import jax.numpy as jnp
from jax.experimental import pallas as pl
from jax.experimental.pallas import tpu as pltpu


def _round_up(x, m):
    return ((x + m - 1) // m) * m


def _leaky_relu(x, negative_slope=0.2):
    # Single VPU select (no extra broadcasts).
    return jnp.where(x > 0, x, negative_slope * x)


def discriminator_kernel(x_ref,
                         w1_ref, b1_ref,
                         w2_ref, b2_ref,
                         w3_ref, b3_ref,
                         w4_ref, b4_ref,
                         o_ref):
    # x: (TB, K_pad) bf16; weights bf16 laid out (in, out); biases f32 (1, out).
    x = x_ref[...]

    # Layer 1: (TB, K_pad) @ (K_pad, 1024) + b1 -> LeakyReLU(0.2)
    h = jnp.dot(x, w1_ref[...], preferred_element_type=jnp.float32) + b1_ref[...]
    h = _leaky_relu(h)

    # Layer 2: (TB, 1024) @ (1024, 512) + b2 -> LeakyReLU(0.2)
    h = jnp.dot(h.astype(jnp.bfloat16), w2_ref[...],
                preferred_element_type=jnp.float32) + b2_ref[...]
    h = _leaky_relu(h)

    # Layer 3: (TB, 512) @ (512, 256) + b3 -> LeakyReLU(0.2)
    h = jnp.dot(h.astype(jnp.bfloat16), w3_ref[...],
                preferred_element_type=jnp.float32) + b3_ref[...]
    h = _leaky_relu(h)

    # Layer 4 (padded to 128 lanes): (TB, 256) @ (256, 128) + b4 -> Sigmoid
    z = jnp.dot(h.astype(jnp.bfloat16), w4_ref[...],
                preferred_element_type=jnp.float32) + b4_ref[...]
    # exp + approx reciprocal both go to the EUP slot (VALU stays free).
    o_ref[...] = pl.reciprocal(1.0 + jnp.exp(-z), approx=True)


def init_discriminator_params(key, input_dim, dtype=jnp.bfloat16):
    """Torch-like nn.Linear init (U[-1/sqrt(fan_in), 1/sqrt(fan_in)]).

    Weights stored as (in, out) (transposed vs torch), padded for the kernel:
      * w1 zero-padded along K to a multiple of 128.
      * w4 / b4 zero-padded to 128 output lanes (only column 0 is real).
    Weights are cast to bf16; biases stay f32.
    """
    k_pad = _round_up(input_dim, 128)
    dims = [(input_dim, 1024), (1024, 512), (512, 256), (256, 1)]
    params = {}
    for i, (fan_in, fan_out) in enumerate(dims, start=1):
        key, kw, kb = jax.random.split(key, 3)
        bound = 1.0 / (fan_in ** 0.5)
        w = jax.random.uniform(kw, (fan_in, fan_out), jnp.float32,
                               minval=-bound, maxval=bound)
        b = jax.random.uniform(kb, (1, fan_out), jnp.float32,
                               minval=-bound, maxval=bound)
        if i == 1 and k_pad != fan_in:
            w = jnp.pad(w, ((0, k_pad - fan_in), (0, 0)))
        if i == 4:
            w = jnp.pad(w, ((0, 0), (0, 128 - fan_out)))
            b = jnp.pad(b, ((0, 0), (0, 128 - fan_out)))
        params[f"w{i}"] = w.astype(dtype)
        params[f"b{i}"] = b  # f32
    return params


def discriminator_forward(x, params, *, block_b=512):
    """x: (B, input_dim) f32. Returns (B, 1) f32 sigmoid outputs."""
    B, D = x.shape
    k_pad = params["w1"].shape[0]
    assert D <= k_pad

    # Batch tiling: TB is a multiple of 8; the batch is zero-padded up to a
    # multiple of TB so every grid step sees a full (8,128)-aligned tile.
    block_b = max(8, _round_up(block_b, 8))
    b_pad8 = _round_up(max(B, 8), 8)
    tb = min(block_b, b_pad8)
    b_pad = _round_up(b_pad8, tb)
    grid = (b_pad // tb,)

    x_p = jnp.zeros((b_pad, k_pad), jnp.bfloat16)
    x_p = x_p.at[:B, :D].set(x.astype(jnp.bfloat16))

    w1, b1 = params["w1"], params["b1"]
    w2, b2 = params["w2"], params["b2"]
    w3, b3 = params["w3"], params["b3"]
    w4, b4 = params["w4"], params["b4"]

    in_specs = [
        pl.BlockSpec((tb, k_pad), lambda i: (i, 0)),            # x tile streams
        pl.BlockSpec((k_pad, 1024), lambda i: (0, 0)),          # weights pinned
        pl.BlockSpec((1, 1024), lambda i: (0, 0)),
        pl.BlockSpec((1024, 512), lambda i: (0, 0)),
        pl.BlockSpec((1, 512), lambda i: (0, 0)),
        pl.BlockSpec((512, 256), lambda i: (0, 0)),
        pl.BlockSpec((1, 256), lambda i: (0, 0)),
        pl.BlockSpec((256, 128), lambda i: (0, 0)),
        pl.BlockSpec((1, 128), lambda i: (0, 0)),
    ]
    out_specs = pl.BlockSpec((tb, 128), lambda i: (i, 0))

    flops = 2 * b_pad * (k_pad * 1024 + 1024 * 512 + 512 * 256 + 256 * 128)
    weight_bytes = sum(int(w.size) * w.dtype.itemsize
                       for w in (w1, w2, w3, w4, b1, b2, b3, b4))
    bytes_accessed = int(x_p.size) * 2 + weight_bytes + b_pad * 128 * 4
    cost = pl.CostEstimate(flops=flops,
                           transcendentals=b_pad * 128,
                           bytes_accessed=bytes_accessed)

    out = pl.pallas_call(
        discriminator_kernel,
        out_shape=jax.ShapeDtypeStruct((b_pad, 128), jnp.float32),
        grid=grid,
        in_specs=in_specs,
        out_specs=out_specs,
        compiler_params=pltpu.CompilerParams(
            dimension_semantics=("parallel",),
            vmem_limit_bytes=32 * 1024 * 1024,
        ),
        cost_estimate=cost,
    )(x_p, w1, b1, w2, b2, w3, b3, w4, b4)

    return out[:B, :1]


def _reference_forward(x, params):
    """Pure-JAX reference with identical bf16 casts / padded params."""
    B, D = x.shape
    k_pad = params["w1"].shape[0]
    h = jnp.zeros((B, k_pad), jnp.bfloat16).at[:, :D].set(x.astype(jnp.bfloat16))
    for i in range(1, 4):
        h = jnp.dot(h, params[f"w{i}"],
                    preferred_element_type=jnp.float32) + params[f"b{i}"]
        h = jnp.where(h > 0, h, 0.2 * h).astype(jnp.bfloat16)
    z = jnp.dot(h, params["w4"],
                preferred_element_type=jnp.float32) + params["b4"]
    return jax.nn.sigmoid(z)[:, :1]


if __name__ == "__main__":
    key = jax.random.PRNGKey(0)
    k_params, k_x1, k_x2 = jax.random.split(key, 3)

    # --- small test (single grid step) ---
    batch, input_dim = 8, 64
    params = init_discriminator_params(k_params, input_dim)
    x = jax.random.normal(k_x1, (batch, input_dim), jnp.float32)

    out = jax.block_until_ready(discriminator_forward(x, params))
    ref = _reference_forward(x, params)
    assert out.shape == (batch, 1)
    assert jnp.allclose(out, ref, atol=5e-3), "mismatch vs JAX reference (small)"

    # --- multi-tile test (exercises batch grid + K / lane padding) ---
    batch2, input_dim2 = 300, 784
    params2 = init_discriminator_params(k_params, input_dim2)
    x2 = jax.random.normal(k_x2, (batch2, input_dim2), jnp.float32)

    out2 = jax.block_until_ready(discriminator_forward(x2, params2, block_b=128))
    ref2 = _reference_forward(x2, params2)
    assert out2.shape == (batch2, 1)
    assert jnp.allclose(out2, ref2, atol=5e-3), "mismatch vs JAX reference (tiled)"

    print("KERNEL_OK")
</pallas_src>

<mosaic_0001>
module attributes {stable_mosaic.version = 11 : i64} {
  func.func @discriminator_kernel(%arg0: i32, %arg1: memref<8x128xbf16, #tpu.memory_space<vmem>>, %arg2: memref<128x1024xbf16, #tpu.memory_space<vmem>>, %arg3: memref<1x1024xf32, #tpu.memory_space<vmem>>, %arg4: memref<1024x512xbf16, #tpu.memory_space<vmem>>, %arg5: memref<1x512xf32, #tpu.memory_space<vmem>>, %arg6: memref<512x256xbf16, #tpu.memory_space<vmem>>, %arg7: memref<1x256xf32, #tpu.memory_space<vmem>>, %arg8: memref<256x128xbf16, #tpu.memory_space<vmem>>, %arg9: memref<1x128xf32, #tpu.memory_space<vmem>>, %arg10: memref<8x128xf32, #tpu.memory_space<vmem>>) attributes {dimension_semantics = [#tpu.dimension_semantics<parallel>], iteration_bounds = array<i64: 1>, scalar_prefetch = 0 : i64, scratch_operands = 0 : i64, tpu.core_type = #tpu.core_type<tc>, window_params = [{transform_indices = @transform_0, window_bounds = array<i64: 8, 128>}, {pipeline_mode = #tpu.pipeline_mode<synchronous>, transform_indices = @transform_1, window_bounds = array<i64: 128, 1024>}, {pipeline_mode = #tpu.pipeline_mode<synchronous>, transform_indices = @transform_2, window_bounds = array<i64: 1, 1024>}, {pipeline_mode = #tpu.pipeline_mode<synchronous>, transform_indices = @transform_3, window_bounds = array<i64: 1024, 512>}, {pipeline_mode = #tpu.pipeline_mode<synchronous>, transform_indices = @transform_4, window_bounds = array<i64: 1, 512>}, {pipeline_mode = #tpu.pipeline_mode<synchronous>, transform_indices = @transform_5, window_bounds = array<i64: 512, 256>}, {pipeline_mode = #tpu.pipeline_mode<synchronous>, transform_indices = @transform_6, window_bounds = array<i64: 1, 256>}, {pipeline_mode = #tpu.pipeline_mode<synchronous>, transform_indices = @transform_7, window_bounds = array<i64: 256, 128>}, {pipeline_mode = #tpu.pipeline_mode<synchronous>, transform_indices = @transform_8, window_bounds = array<i64: 1, 128>}, {transform_indices = @transform_9, window_bounds = array<i64: 8, 128>}]} {
    %c0 = arith.constant 0 : index
    %c0_0 = arith.constant 0 : index
    %0 = vector.load %arg1[%c0, %c0_0] : memref<8x128xbf16, #tpu.memory_space<vmem>>, vector<8x128xbf16>
    %c0_1 = arith.constant 0 : index
    %c0_2 = arith.constant 0 : index
    %1 = vector.load %arg2[%c0_1, %c0_2] : memref<128x1024xbf16, #tpu.memory_space<vmem>>, vector<128x1024xbf16>
    %cst = arith.constant dense<0.000000e+00> : vector<8x1024xf32>
    %2 = tpu.matmul %0, %1, %cst {dimension_numbers = #tpu.dot_dimension_numbers<[1], [0], [0], [1], [0, 0, 1, 1], [], []>} : vector<8x128xbf16>, vector<128x1024xbf16>, vector<8x1024xf32> -> vector<8x1024xf32>
    %c0_3 = arith.constant 0 : index
    %c0_4 = arith.constant 0 : index
    %3 = vector.load %arg3[%c0_3, %c0_4] : memref<1x1024xf32, #tpu.memory_space<vmem>>, vector<1x1024xf32>
    %4 = vector.broadcast %3 : vector<1x1024xf32> to vector<8x1024xf32>
    %5 = arith.addf %2, %4 : vector<8x1024xf32>
    %cst_5 = arith.constant 0.000000e+00 : f32
    %6 = vector.broadcast %cst_5 : f32 to vector<8x1024xf32>
    %7 = arith.cmpf ogt, %5, %6 : vector<8x1024xf32>
    %cst_6 = arith.constant 2.000000e-01 : f32
    %8 = vector.broadcast %cst_6 : f32 to vector<8x1024xf32>
    %9 = arith.mulf %8, %5 : vector<8x1024xf32>
    %10 = arith.select %7, %5, %9 : vector<8x1024xi1>, vector<8x1024xf32>
    %11 = arith.truncf %10 : vector<8x1024xf32> to vector<8x1024xbf16>
    %c0_7 = arith.constant 0 : index
    %c0_8 = arith.constant 0 : index
    %12 = vector.load %arg4[%c0_7, %c0_8] : memref<1024x512xbf16, #tpu.memory_space<vmem>>, vector<1024x512xbf16>
    %cst_9 = arith.constant dense<0.000000e+00> : vector<8x512xf32>
    %13 = tpu.matmul %11, %12, %cst_9 {dimension_numbers = #tpu.dot_dimension_numbers<[1], [0], [0], [1], [0, 0, 1, 1], [], []>} : vector<8x1024xbf16>, vector<1024x512xbf16>, vector<8x512xf32> -> vector<8x512xf32>
    %c0_10 = arith.constant 0 : index
    %c0_11 = arith.constant 0 : index
    %14 = vector.load %arg5[%c0_10, %c0_11] : memref<1x512xf32, #tpu.memory_space<vmem>>, vector<1x512xf32>
    %15 = vector.broadcast %14 : vector<1x512xf32> to vector<8x512xf32>
    %16 = arith.addf %13, %15 : vector<8x512xf32>
    %cst_12 = arith.constant 0.000000e+00 : f32
    %17 = vector.broadcast %cst_12 : f32 to vector<8x512xf32>
    %18 = arith.cmpf ogt, %16, %17 : vector<8x512xf32>
    %cst_13 = arith.constant 2.000000e-01 : f32
    %19 = vector.broadcast %cst_13 : f32 to vector<8x512xf32>
    %20 = arith.mulf %19, %16 : vector<8x512xf32>
    %21 = arith.select %18, %16, %20 : vector<8x512xi1>, vector<8x512xf32>
    %22 = arith.truncf %21 : vector<8x512xf32> to vector<8x512xbf16>
    %c0_14 = arith.constant 0 : index
    %c0_15 = arith.constant 0 : index
    %23 = vector.load %arg6[%c0_14, %c0_15] : memref<512x256xbf16, #tpu.memory_space<vmem>>, vector<512x256xbf16>
    %cst_16 = arith.constant dense<0.000000e+00> : vector<8x256xf32>
    %24 = tpu.matmul %22, %23, %cst_16 {dimension_numbers = #tpu.dot_dimension_numbers<[1], [0], [0], [1], [0, 0, 1, 1], [], []>} : vector<8x512xbf16>, vector<512x256xbf16>, vector<8x256xf32> -> vector<8x256xf32>
    %c0_17 = arith.constant 0 : index
    %c0_18 = arith.constant 0 : index
    %25 = vector.load %arg7[%c0_17, %c0_18] : memref<1x256xf32, #tpu.memory_space<vmem>>, vector<1x256xf32>
    %26 = vector.broadcast %25 : vector<1x256xf32> to vector<8x256xf32>
    %27 = arith.addf %24, %26 : vector<8x256xf32>
    %cst_19 = arith.constant 0.000000e+00 : f32
    %28 = vector.broadcast %cst_19 : f32 to vector<8x256xf32>
    %29 = arith.cmpf ogt, %27, %28 : vector<8x256xf32>
    %cst_20 = arith.constant 2.000000e-01 : f32
    %30 = vector.broadcast %cst_20 : f32 to vector<8x256xf32>
    %31 = arith.mulf %30, %27 : vector<8x256xf32>
    %32 = arith.select %29, %27, %31 : vector<8x256xi1>, vector<8x256xf32>
    %33 = arith.truncf %32 : vector<8x256xf32> to vector<8x256xbf16>
    %c0_21 = arith.constant 0 : index
    %c0_22 = arith.constant 0 : index
    %34 = vector.load %arg8[%c0_21, %c0_22] : memref<256x128xbf16, #tpu.memory_space<vmem>>, vector<256x128xbf16>
    %cst_23 = arith.constant dense<0.000000e+00> : vector<8x128xf32>
    %35 = tpu.matmul %33, %34, %cst_23 {dimension_numbers = #tpu.dot_dimension_numbers<[1], [0], [0], [1], [0, 0, 1, 1], [], []>} : vector<8x256xbf16>, vector<256x128xbf16>, vector<8x128xf32> -> vector<8x128xf32>
    %c0_24 = arith.constant 0 : index
    %c0_25 = arith.constant 0 : index
    %36 = vector.load %arg9[%c0_24, %c0_25] : memref<1x128xf32, #tpu.memory_space<vmem>>, vector<1x128xf32>
    %37 = vector.broadcast %36 : vector<1x128xf32> to vector<8x128xf32>
    %38 = arith.addf %35, %37 : vector<8x128xf32>
    %cst_26 = arith.constant 0.000000e+00 : f32
    %39 = vector.broadcast %cst_26 : f32 to vector<8x128xf32>
    %40 = arith.subf %39, %38 : vector<8x128xf32>
    %41 = math.exp %40 : vector<8x128xf32>
    %cst_27 = arith.constant 1.000000e+00 : f32
    %42 = vector.broadcast %cst_27 : f32 to vector<8x128xf32>
    %43 = arith.addf %42, %41 : vector<8x128xf32>
    %44 = tpu.reciprocal %43 {approx = true} : vector<8x128xf32> -> vector<8x128xf32>
    %c0_28 = arith.constant 0 : index
    %c0_29 = arith.constant 0 : index
    %45 = vector.load %arg10[%c0_28, %c0_29] : memref<8x128xf32, #tpu.memory_space<vmem>>, vector<8x128xf32>
    tpu.vector_store %arg10[%c0_28, %c0_29], %44 {strides = array<i32>} : memref<8x128xf32, #tpu.memory_space<vmem>>, vector<8x128xf32>,
    return
  }
  func.func @transform_0(%arg0: i32) -> (i32, i32) {
    %c0_i32 = arith.constant 0 : i32
    %c0_i32_0 = arith.constant 0 : i32
    return %arg0, %c0_i32 : i32, i32
  }
  func.func @transform_1(%arg0: i32) -> (i32, i32) {
    %c0_i32 = arith.constant 0 : i32
    %c0_i32_0 = arith.constant 0 : i32
    %c0_i32_1 = arith.constant 0 : i32
    return %c0_i32, %c0_i32_0 : i32, i32
  }
  func.func @transform_2(%arg0: i32) -> (i32, i32) {
    %c0_i32 = arith.constant 0 : i32
    %c0_i32_0 = arith.constant 0 : i32
    %c0_i32_1 = arith.constant 0 : i32
    return %c0_i32, %c0_i32_0 : i32, i32
  }
  func.func @transform_3(%arg0: i32) -> (i32, i32) {
    %c0_i32 = arith.constant 0 : i32
    %c0_i32_0 = arith.constant 0 : i32
    %c0_i32_1 = arith.constant 0 : i32
    return %c0_i32, %c0_i32_0 : i32, i32
  }
  func.func @transform_4(%arg0: i32) -> (i32, i32) {
    %c0_i32 = arith.constant 0 : i32
    %c0_i32_0 = arith.constant 0 : i32
    %c0_i32_1 = arith.constant 0 : i32
    return %c0_i32, %c0_i32_0 : i32, i32
  }
  func.func @transform_5(%arg0: i32) -> (i32, i32) {
    %c0_i32 = arith.constant 0 : i32
    %c0_i32_0 = arith.constant 0 : i32
    %c0_i32_1 = arith.constant 0 : i32
    return %c0_i32, %c0_i32_0 : i32, i32
  }
  func.func @transform_6(%arg0: i32) -> (i32, i32) {
    %c0_i32 = arith.constant 0 : i32
    %c0_i32_0 = arith.constant 0 : i32
    %c0_i32_1 = arith.constant 0 : i32
    return %c0_i32, %c0_i32_0 : i32, i32
  }
  func.func @transform_7(%arg0: i32) -> (i32, i32) {
    %c0_i32 = arith.constant 0 : i32
    %c0_i32_0 = arith.constant 0 : i32
    %c0_i32_1 = arith.constant 0 : i32
    return %c0_i32, %c0_i32_0 : i32, i32
  }
  func.func @transform_8(%arg0: i32) -> (i32, i32) {
    %c0_i32 = arith.constant 0 : i32
    %c0_i32_0 = arith.constant 0 : i32
    %c0_i32_1 = arith.constant 0 : i32
    return %c0_i32, %c0_i32_0 : i32, i32
  }
  func.func @transform_9(%arg0: i32) -> (i32, i32) {
    %c0_i32 = arith.constant 0 : i32
    %c0_i32_0 = arith.constant 0 : i32
    return %arg0, %c0_i32 : i32, i32
  }
}

</mosaic_0001>

<bundles_post_ra>
// kernel: tpu_custom_call.1
= control target key start
LH: loop header
LB: loop body
LE: loop exit
PB: predicated region body
PF: predicated region fallthrough
CT: control target
= control target key end

     0   :  { %14 = vsyncpa [#allocation3], 0  ;;  %s4690_s0 = inlined_call_operand.hbm [shape: bf16[8,128], index: 0, kind: input, shape index: {}]   ;;  %s4691_s1 = inlined_call_operand.hbm [shape: bf16[128,1024], index: 1, kind: input, shape index: {}]   ;;  %s4692_s2 = inlined_call_operand.hbm [shape: f32[1,1024], index: 2, kind: input, shape index: {}]   ;;  %s4693_s3 = inlined_call_operand.hbm [shape: bf16[1024,512], index: 3, kind: input, shape index: {}]   ;;  %s4694_s4 = inlined_call_operand.vmem [shape: f32[1,512], index: 4, kind: input, shape index: {}]   ;;  %s4695_s5 = inlined_call_operand.hbm [shape: bf16[512,256], index: 5, kind: input, shape index: {}]   ;;  %s4696_s6 = inlined_call_operand.vmem [shape: f32[1,256], index: 6, kind: input, shape index: {}]   ;;  %s4697_s7 = inlined_call_operand.hbm [shape: bf16[256,128], index: 7, kind: input, shape index: {}]   ;;  %s4698_s8 = inlined_call_operand.vmem [shape: f32[1,128], index: 8, kind: input, shape index: {}]   ;;  %s4699_s9 = inlined_call_operand.hbm [shape: f32[8,128], index: 9, kind: output, shape index: {}]  }
   0x1   :  { %15 = vsyncpa [#allocation6], 0 }
   0x2   :  { %16 = vsyncpa [#allocation9], 0 }
   0x3   :  { %17 = vsyncpa [#allocation12], 0 }
   0x4   :  { %18 = vsyncpa [#allocation4], 0  ;;  %s4459_s30 = smov [#allocation5]   ;;  %s4295_s13 = scalar_lea.hbm %s4691_s1, 8192 }
   0x5   :  { %s34_s10 = sshll.u32 %s4459_s30, 4  ;;  %p4296_p0 = scmp.ne.s32.totalorder %s4691_s1, %s4295_s13  ;;  %s35_s10 = int_to_ptr.vmem [resolvable:$true] %s34_s10 }
   0x6   :  { %p4299_p1 = scmp.lt.u32.totalorder %s4295_s13, %s4691_s1 }
   0x8   :  { %p4301_p2 = pnand %p4299_p1, %p4296_p0 }
   0xa   :  { %4304 = shalt.err (!%p4301_p2)
}
   0xb   :  { %s4305_s18 = scalar_lea.vmem %s35_s10, 8192  ;;  %p4310_p4 = scmp.lt.s32.totalorder %s35_s10, %s35_s10 }
   0xc   :  { %p4306_p3 = scmp.ne.s32.totalorder %s35_s10, %s4305_s18  ;;  %p4311_p5 = scmp.lt.s32.totalorder %s4305_s18, %s4305_s18 }
   0xe   :  { %p4312_p6 = por %p4311_p5, %p4310_p4 }
  0x10   :  { %p4313_p7 = pnand %p4312_p6, %p4306_p3 }
  0x12   :  { %4316 = shalt.err (!%p4313_p7)
}
  0x13   :  { %s4460_s19 = smov 512   ;;  %s4461_s20 = smov 32  }
  0x14   :  { %40 = dma.hbm_to_vmem [thread:$0]  %s4691_s1, 8192, %s35_s10, [#allocation6], %s4460_s19, %s4460_s19, %s4461_s20  }
  0x15   :  { %s4462_s23 = smov [#allocation8]   ;;  %s4317_s27 = scalar_lea.hbm %s4693_s3, 32768 }
  0x16   :  { %s56_s24 = sshll.u32 %s4462_s23, 4  ;;  %p4318_p8 = scmp.ne.s32.totalorder %s4693_s3, %s4317_s27  ;;  %s57_s24 = int_to_ptr.vmem [resolvable:$true] %s56_s24 }
  0x17   :  { %p4321_p9 = scmp.lt.u32.totalorder %s4317_s27, %s4693_s3 }
  0x19   :  { %p4323_p10 = pnand %p4321_p9, %p4318_p8 }
  0x1b   :  { %4326 = shalt.err (!%p4323_p10)
}
  0x1c   :  { %s4327_s12 = scalar_lea.vmem %s57_s24, 32768  ;;  %p4332_p12 = scmp.lt.s32.totalorder %s57_s24, %s57_s24 }
  0x1d   :  { %p4328_p11 = scmp.ne.s32.totalorder %s57_s24, %s4327_s12  ;;  %p4333_p13 = scmp.lt.s32.totalorder %s4327_s12, %s4327_s12 }
  0x1f   :  { %p4334_p0 = por %p4333_p13, %p4332_p12 }
  0x21   :  { %p4335_p1 = pnand %p4334_p0, %p4328_p11 }
  0x23   :  { %4338 = shalt.err (!%p4335_p1)
}
  0x24   :  { %s4463_s1 = smov 256   ;;  %s4464_s10 = smov 16  }
  0x25   :  { %62 = dma.hbm_to_vmem [thread:$0]  %s4693_s3, 32768, %s57_s24, [#allocation9], %s4463_s1, %s4463_s1, %s4464_s10  }
  0x26   :  { %s4465_s15 = smov [#allocation2]   ;;  %s4466_s17 = smov [#allocation7]  }
  0x27   :  { %s25_s16 = sshll.u32 %s4465_s15, 4  ;;  %s47_s18 = sshll.u32 %s4466_s17, 4  ;;  %s26_s16 = int_to_ptr.vmem [resolvable:$true] %s25_s16  ;;  %s48_s18 = int_to_ptr.vmem [resolvable:$true] %s47_s18 }
  0x28   :  { %s4339_s21 = scalar_lea.hbm %s4690_s0, 64 }
  0x29   :  { %p4340_p2 = scmp.ne.s32.totalorder %s4690_s0, %s4339_s21  ;;  %p4343_p3 = scmp.lt.u32.totalorder %s4339_s21, %s4690_s0 }
  0x2b   :  { %p4345_p4 = pnand %p4343_p3, %p4340_p2 }
  0x2d   :  { %4348 = shalt.err (!%p4345_p4)
}
  0x2e   :  { %s4349_s3 = scalar_lea.vmem %s26_s16, 64  ;;  %p4354_p6 = scmp.lt.s32.totalorder %s26_s16, %s26_s16 }
  0x2f   :  { %p4350_p5 = scmp.ne.s32.totalorder %s26_s16, %s4349_s3  ;;  %p4355_p7 = scmp.lt.s32.totalorder %s4349_s3, %s4349_s3 }
  0x31   :  { %p4356_p8 = por %p4355_p7, %p4354_p6 }
  0x33   :  { %p4357_p9 = pnand %p4356_p8, %p4350_p5 }
  0x35   :  { %4360 = shalt.err (!%p4357_p9)
}
  0x36   :  { %28 = dma.hbm_to_vmem [thread:$0]  %s4690_s0, 64, %s26_s16, [#allocation3]  }
  0x37   :  { %s4361_s30 = scalar_lea.hbm %s4692_s2, 128 }
  0x38   :  { %p4362_p10 = scmp.ne.s32.totalorder %s4692_s2, %s4361_s30  ;;  %p4365_p11 = scmp.lt.u32.totalorder %s4361_s30, %s4692_s2 }
  0x3a   :  { %p4367_p12 = pnand %p4365_p11, %p4362_p10 }
  0x3c   :  { %4370 = shalt.err (!%p4367_p12)
}
  0x3d   :  { %s4371_s13 = scalar_lea.vmem %s48_s18, 128  ;;  %p4376_p0 = scmp.lt.s32.totalorder %s48_s18, %s48_s18 }
  0x3e   :  { %p4372_p13 = scmp.ne.s32.totalorder %s48_s18, %s4371_s13  ;;  %p4377_p1 = scmp.lt.s32.totalorder %s4371_s13, %s4371_s13 }
  0x40   :  { %p4378_p2 = por %p4377_p1, %p4376_p0 }
  0x42   :  { %p4379_p3 = pnand %p4378_p2, %p4372_p13 }
  0x44   :  { %4382 = shalt.err (!%p4379_p3)
}
  0x45   :  { %50 = dma.hbm_to_vmem [thread:$0]  %s4692_s2, 128, %s48_s18, [#allocation6]  }
  0x46   :  { %s4467_s15 = smov [#allocation10]   ;;  %s4383_s20 = scalar_lea.hbm %s4695_s5, 8192 }
  0x47   :  { %s70_s16 = sshll.u32 %s4467_s15, 4  ;;  %p4384_p4 = scmp.ne.s32.totalorder %s4695_s5, %s4383_s20  ;;  %s71_s16 = int_to_ptr.vmem [resolvable:$true] %s70_s16 }
  0x48   :  { %p4387_p5 = scmp.lt.u32.totalorder %s4383_s20, %s4695_s5 }
  0x4a   :  { %p4389_p6 = pnand %p4387_p5, %p4384_p4 }
  0x4c   :  { %4392 = shalt.err (!%p4389_p6)
}
  0x4d   :  { %s4393_s26 = scalar_lea.vmem %s71_s16, 8192  ;;  %p4398_p8 = scmp.lt.s32.totalorder %s71_s16, %s71_s16 }
  0x4e   :  { %p4394_p7 = scmp.ne.s32.totalorder %s71_s16, %s4393_s26  ;;  %p4399_p9 = scmp.lt.s32.totalorder %s4393_s26, %s4393_s26 }
  0x50   :  { %p4400_p10 = por %p4399_p9, %p4398_p8 }
  0x52   :  { %p4401_p11 = pnand %p4400_p10, %p4394_p7 }
  0x54   :  { %4404 = shalt.err (!%p4401_p11)
}
  0x55   :  { %s4468_s2 = smov 128   ;;  %s4469_s18 = smov 8  }
  0x56   :  { %76 = dma.hbm_to_vmem [thread:$0]  %s4695_s5, 8192, %s71_s16, [#allocation9], %s4468_s2, %s4468_s2, %s4469_s18  }
  0x57   :  { %s4470_s27 = smov [#allocation11]   ;;  %s4405_s11 = scalar_lea.hbm %s4697_s7, 2048 }
  0x58   :  { %s84_s28 = sshll.u32 %s4470_s27, 4  ;;  %p4406_p12 = scmp.ne.s32.totalorder %s4697_s7, %s4405_s11  ;;  %s85_s28 = int_to_ptr.vmem [resolvable:$true] %s84_s28 }
  0x59   :  { %p4409_p13 = scmp.lt.u32.totalorder %s4405_s11, %s4697_s7 }
  0x5b   :  { %p4411_p0 = pnand %p4409_p13, %p4406_p12 }
  0x5d   :  { %4414 = shalt.err (!%p4411_p0)
}
  0x5e   :  { %s4415_s0 = scalar_lea.vmem %s85_s28, 2048  ;;  %p4420_p2 = scmp.lt.s32.totalorder %s85_s28, %s85_s28 }
  0x5f   :  { %p4416_p1 = scmp.ne.s32.totalorder %s85_s28, %s4415_s0  ;;  %p4421_p3 = scmp.lt.s32.totalorder %s4415_s0, %s4415_s0 }
  0x61   :  { %p4422_p4 = por %p4421_p3, %p4420_p2 }
  0x63   :  { %p4423_p5 = pnand %p4422_p4, %p4416_p1 }
  0x65   :  { %4426 = shalt.err (!%p4423_p5)
}
  0x66   :  { %s4471_s5 = smov 64   ;;  %s4472_s14 = smov 4  }
  0x67   :  { %90 = dma.hbm_to_vmem [thread:$0]  %s4697_s7, 2048, %s85_s28, [#allocation12], %s4471_s5, %s4471_s5, %s4472_s14  }
  0x68   :  { %4449 = dma.done.wait [#allocation3], 64  }
  0x69   :  { %4450 = vsyncadd [#allocation3], 4294967232 }
  0x6a   :  { %4451 = dma.done.wait [#allocation6], 8320  }
  0x6b   :  { %4452 = vsyncadd [#allocation6], 4294958976 }
  0x6c   :  { %4453 = dma.done.wait [#allocation9], 40960  }
  0x6d   :  { %4454 = vsyncadd [#allocation9], 4294926336 }
  0x6e   :  { %4455 = dma.done.wait [#allocation12], 2048  }
  0x6f   :  { %4456 = vsyncadd [#allocation12], 4294965248  ;;  %v4473_v0 = vmov 0   ;;  %v113_v1 = vld [vmem:[#allocation5] sm:$0xff]  ;;  %v115_v18 = vld [vmem:[#allocation5 + $0x10] sm:$0xff]  ;;  %s4474_s21 = smov [#allocation13]  }
  0x70   :  { %571 = vmatprep.mubr.bf16.mxu1 %v4473_v0  ;;  %653 = vmatprep.mubr.bf16.mxu0 %v4473_v0  ;;  %v117_v2 = vld [vmem:[#allocation5 + $0x20] sm:$0xff]  ;;  %v119_v19 = vld [vmem:[#allocation5 + $0x30] sm:$0xff]  ;;  %v114_v53 = vld [vmem:[#allocation5 + $0x8] sm:$0xff]  ;;  %s3310_s22 = sshll.u32 %s4474_s21, 4  ;;  %s3311_s22 = int_to_ptr.vmem [resolvable:$true] %s3310_s22 }
  0x71   :  { %v121_v3 = vld [vmem:[#allocation5 + $0x40] sm:$0xff]  ;;  %v3323_v4 = vcombine.high %v113_v1, %v117_v2  ;;  %v3322_v5 = vcombine.low %v113_v1, %v117_v2  ;;  %v123_v20 = vld [vmem:[#allocation5 + $0x50] sm:$0xff]  ;;  %v3327_v22 = vcombine.high %v115_v18, %v119_v19  ;;  %v3326_v23 = vcombine.low %v115_v18, %v119_v19  ;;  %v118_v54 = vld [vmem:[#allocation5 + $0x28] sm:$0xff]  ;;  %s4427_s23 = scalar_lea.vmem %s3311_s22, 128  ;;  %p4432_p7 = scmp.lt.s32.totalorder %s3311_s22, %s3311_s22 }
  0x72   :  { %v125_v6 = vld [vmem:[#allocation5 + $0x60] sm:$0xff]  ;;  %v127_v24 = vld [vmem:[#allocation5 + $0x70] sm:$0xff]  ;;  %v3325_v58 = vcombine.high %v114_v53, %v118_v54  ;;  %v122_v59 = vld [vmem:[#allocation5 + $0x48] sm:$0xff]  ;;  %v3324_v2 = vcombine.low %v114_v53, %v118_v54  ;;  %p4428_p6 = scmp.ne.s32.totalorder %s3311_s22, %s4427_s23  ;;  %p4433_p8 = scmp.lt.s32.totalorder %s4427_s23, %s4427_s23 }
  0x73   :  { %v3331_v7 = vcombine.high %v121_v3, %v125_v6  ;;  %v129_v8 = vld [vmem:[#allocation5 + $0x80] sm:$0xff]  ;;  %539 = vmatprep.subr.bf16.mxu1 %v3323_v4  ;;  %v3330_v10 = vcombine.low %v121_v3, %v125_v6  ;;  %v3335_v26 = vcombine.high %v123_v20, %v127_v24  ;;  %v131_v27 = vld [vmem:[#allocation5 + $0x90] sm:$0xff]  ;;  %621 = vmatprep.subr.bf16.mxu0 %v3327_v22  ;;  %v126_v60 = vld [vmem:[#allocation5 + $0x68] sm:$0xff] }
  0x74   :  { %v133_v9 = vld [vmem:[#allocation5 + $0xa0] sm:$0xff]  ;;  %540 = vmatpush1.bf16.msra.mxu1 %v3322_v5  ;;  %v135_v28 = vld [vmem:[#allocation5 + $0xb0] sm:$0xff]  ;;  %622 = vmatpush1.bf16.msra.mxu0 %v3326_v23  ;;  %v3334_v31 = vcombine.low %v123_v20, %v127_v24  ;;  %v4599_v1 = vld [vmem:[#allocation2] sm:$0xf]  ;;  %v3333_v3 = vcombine.high %v122_v59, %v126_v60  ;;  %p4434_p9 = por %p4433_p8, %p4432_p7 }
  0x75   :  { %541 = vmatprep.subr.bf16.mxu1 %v3331_v7  ;;  %v3339_v11 = vcombine.high %v129_v8, %v133_v9  ;;  %v137_v12 = vld [vmem:[#allocation5 + $0xc0] sm:$0xff]  ;;  %v3338_v14 = vcombine.low %v129_v8, %v133_v9  ;;  %623 = vmatprep.subr.bf16.mxu0 %v3335_v26  ;;  %v3343_v33 = vcombine.high %v131_v27, %v135_v28  ;;  %v139_v35 = vld [vmem:[#allocation5 + $0xd0] sm:$0xff]  ;;  %v130_v7 = vld [vmem:[#allocation5 + $0x88] sm:$0xff] }
  0x76   :  { %v141_v13 = vld [vmem:[#allocation5 + $0xe0] sm:$0xff]  ;;  %v143_v36 = vld [vmem:[#allocation5 + $0xf0] sm:$0xff]  ;;  %v3342_v39 = vcombine.low %v131_v27, %v135_v28  ;;  %v134_v8 = vld [vmem:[#allocation5 + $0xa8] sm:$0xff]  ;;  %p4435_p10 = pnand %p4434_p9, %p4428_p6 }
  0x77   :  { %v3347_v15 = vcombine.high %v137_v12, %v141_v13  ;;  %v145_v16 = vld [vmem:[#allocation5 + $0x100] sm:$0xff]  ;;  %v3346_v21 = vcombine.low %v137_v12, %v141_v13  ;;  %v3351_v41 = vcombine.high %v139_v35, %v143_v36  ;;  %v147_v43 = vld [vmem:[#allocation5 + $0x110] sm:$0xff]  ;;  %v3350_v47 = vcombine.low %v139_v35, %v143_v36  ;;  %v138_v13 = vld [vmem:[#allocation5 + $0xc8] sm:$0xff] }
  0x78   :  { %542 = vmatpush1.bf16.msra.mxu1 %v3330_v10  ;;  %v149_v17 = vld [vmem:[#allocation5 + $0x120] sm:$0xff]  ;;  %624 = vmatpush1.bf16.msra.mxu0 %v3334_v31  ;;  %v151_v44 = vld [vmem:[#allocation5 + $0x130] sm:$0xff]  ;;  %v3332_v10 = vcombine.low %v122_v59, %v126_v60  ;;  %v3341_v12 = vcombine.high %v130_v7, %v134_v8  ;;  %v146_v19 = vld [vmem:[#allocation5 + $0x108] sm:$0xff] }
  0x79   :  { %543 = vmatprep.subr.bf16.mxu1 %v3339_v11  ;;  %v3355_v25 = vcombine.high %v145_v16, %v149_v17  ;;  %v153_v29 = vld [vmem:[#allocation5 + $0x140] sm:$0xff]  ;;  %v3354_v32 = vcombine.low %v145_v16, %v149_v17  ;;  %625 = vmatprep.subr.bf16.mxu0 %v3343_v33  ;;  %v3359_v49 = vcombine.high %v147_v43, %v151_v44  ;;  %v155_v51 = vld [vmem:[#allocation5 + $0x150] sm:$0xff]  ;;  %v3797_v17 = vld [vmem:[#allocation8 + $0x4] ss:$16 sps:$4 sm:$0xff]  }
  0x7a   :  { %v157_v30 = vld [vmem:[#allocation5 + $0x160] sm:$0xff]  ;;  %v159_v52 = vld [vmem:[#allocation5 + $0x170] sm:$0xff]  ;;  %v3358_v55 = vcombine.low %v147_v43, %v151_v44  ;;  %v3340_v16 = vcombine.low %v130_v7, %v134_v8  ;;  %v150_v20 = vld [vmem:[#allocation5 + $0x128] sm:$0xff] }
  0x7b   :  { %v3363_v34 = vcombine.high %v153_v29, %v157_v30  ;;  %v161_v37 = vld [vmem:[#allocation5 + $0x180] sm:$0xff]  ;;  %v3362_v40 = vcombine.low %v153_v29, %v157_v30  ;;  %v3367_v57 = vcombine.high %v155_v51, %v159_v52  ;;  %v163_v61 = vld [vmem:[#allocation5 + $0x190] sm:$0xff]  ;;  %v3366_v63 = vcombine.low %v155_v51, %v159_v52  ;;  %v3803_v23 = vld [vmem:[#allocation8 + $0x24] ss:$16 sps:$4 sm:$0xff]  }
  0x7c   :  { %544 = vmatpush1.bf16.msra.mxu1 %v3338_v14  ;;  %v165_v38 = vld [vmem:[#allocation5 + $0x1a0] sm:$0xff]  ;;  %626 = vmatpush1.bf16.msra.mxu0 %v3342_v39  ;;  %v167_v62 = vld [vmem:[#allocation5 + $0x1b0] sm:$0xff]  ;;  %v142_v14 = vld [vmem:[#allocation5 + $0xe8] sm:$0xff]  ;;  %v3357_v24 = vcombine.high %v146_v19, %v150_v20  ;;  %v3356_v28 = vcombine.low %v146_v19, %v150_v20 }
  0x7d   :  { %545 = vmatprep.subr.bf16.mxu1 %v3347_v15  ;;  %v3371_v42 = vcombine.high %v161_v37, %v165_v38  ;;  %v169_v45 = vld [vmem:[#allocation5 + $0x1c0] sm:$0xff]  ;;  %v3370_v48 = vcombine.low %v161_v37, %v165_v38  ;;  %627 = vmatprep.subr.bf16.mxu0 %v3351_v41  ;;  %v3375_v4 = vcombine.high %v163_v61, %v167_v62  ;;  %v171_v5 = vld [vmem:[#allocation5 + $0x1d0] sm:$0xff]  ;;  %v158_v26 = vld [vmem:[#allocation5 + $0x168] sm:$0xff] }
  0x7e   :  { %v173_v46 = vld [vmem:[#allocation5 + $0x1e0] sm:$0xff]  ;;  %v175_v6 = vld [vmem:[#allocation5 + $0x1f0] sm:$0xff]  ;;  %v3374_v9 = vcombine.low %v163_v61, %v167_v62  ;;  %v3349_v18 = vcombine.high %v138_v13, %v142_v14  ;;  %v3348_v22 = vcombine.low %v138_v13, %v142_v14  ;;  %v3801_v27 = vld [vmem:[#allocation8 + $0x20] ss:$16 sps:$4 sm:$0xff]  }
  0x7f   :  { %v3379_v50 = vcombine.high %v169_v45, %v173_v46  ;;  %v3378_v56 = vcombine.low %v169_v45, %v173_v46  ;;  %v3383_v11 = vcombine.high %v171_v5, %v175_v6  ;;  %v3382_v15 = vcombine.low %v171_v5, %v175_v6  ;;  %v3809_v29 = vld [vmem:[#allocation8 + $0x44] ss:$16 sps:$4 sm:$0xff]   ;;  %v3807_v33 = vld [vmem:[#allocation8 + $0x40] ss:$16 sps:$4 sm:$0xff]  }
  0x80   :  { %546 = vmatpush1.bf16.msra.mxu1 %v3346_v21  ;;  %628 = vmatpush1.bf16.msra.mxu0 %v3350_v47  ;;  %v3795_v21 = vld [vmem:[#allocation8] ss:$16 sps:$4 sm:$0xff]   ;;  %v3815_v35 = vld [vmem:[#allocation8 + $0x64] ss:$16 sps:$4 sm:$0xff]  }
  0x81   :  { %547 = vmatprep.subr.bf16.mxu1 %v3355_v25  ;;  %629 = vmatprep.subr.bf16.mxu0 %v3359_v49  ;;  %v154_v25 = vld [vmem:[#allocation5 + $0x148] sm:$0xff]  ;;  %v116_v43 = vld [vmem:[#allocation5 + $0x18] sm:$0xff] }
  0x82   :  { %v3365_v30 = vcombine.high %v154_v25, %v158_v26  ;;  %v162_v31 = vld [vmem:[#allocation5 + $0x188] sm:$0xff]  ;;  %v120_v44 = vld [vmem:[#allocation5 + $0x38] sm:$0xff] }
  0x83   :  { %v170_v37 = vld [vmem:[#allocation5 + $0x1c8] sm:$0xff]  ;;  %v128_v49 = vld [vmem:[#allocation5 + $0x78] sm:$0xff]  ;;  %v3328_v53 = vcombine.low %v116_v43, %v120_v44 }
  0x84   :  { %548 = vmatpush1.bf16.msra.mxu1 %v3354_v32  ;;  %630 = vmatpush1.bf16.msra.mxu0 %v3358_v55  ;;  %v166_v32 = vld [vmem:[#allocation5 + $0x1a8] sm:$0xff]  ;;  %v132_v54 = vld [vmem:[#allocation5 + $0x98] sm:$0xff] }
  0x85   :  { %549 = vmatprep.subr.bf16.mxu1 %v3363_v34  ;;  %631 = vmatprep.subr.bf16.mxu0 %v3367_v57  ;;  %v3364_v34 = vcombine.low %v154_v25, %v158_v26  ;;  %v3373_v36 = vcombine.high %v162_v31, %v166_v32  ;;  %v174_v38 = vld [vmem:[#allocation5 + $0x1e8] sm:$0xff]  ;;  %v136_v55 = vld [vmem:[#allocation5 + $0xb8] sm:$0xff] }
  0x86   :  { %v3813_v39 = vld [vmem:[#allocation8 + $0x60] ss:$16 sps:$4 sm:$0xff]   ;;  %v3821_v41 = vld [vmem:[#allocation8 + $0x84] ss:$16 sps:$4 sm:$0xff]   ;;  %v3380_v47 = vcombine.low %v170_v37, %v174_v38  ;;  %v3345_v62 = vcombine.high %v132_v54, %v136_v55 }
  0x87   :  { %v3819_v45 = vld [vmem:[#allocation8 + $0x80] ss:$16 sps:$4 sm:$0xff]   ;;  %v3827_v46 = vld [vmem:[#allocation8 + $0xa4] ss:$16 sps:$4 sm:$0xff]  }
  0x88   :  { %550 = vmatpush1.bf16.msra.mxu1 %v3362_v40  ;;  %632 = vmatpush1.bf16.msra.mxu0 %v3366_v63  ;;  %v3372_v40 = vcombine.low %v162_v31, %v166_v32  ;;  %v3825_v51 = vld [vmem:[#allocation8 + $0xa0] ss:$16 sps:$4 sm:$0xff]   ;;  %v3833_v52 = vld [vmem:[#allocation8 + $0xc4] ss:$16 sps:$4 sm:$0xff]  }
  0x89   :  { %551 = vmatprep.subr.bf16.mxu1 %v3371_v42  ;;  %633 = vmatprep.subr.bf16.mxu0 %v3375_v4  ;;  %v3381_v42 = vcombine.high %v170_v37, %v174_v38  ;;  %v3831_v57 = vld [vmem:[#allocation8 + $0xc0] ss:$16 sps:$4 sm:$0xff]   ;;  %v3851_v8 = vld [vmem:[#allocation8 + $0x124] ss:$16 sps:$4 sm:$0xff]   ;;  %v3810_v37 = vld [vmem:[#allocation8 + $0x48] ss:$16 sps:$4 sm:$0xff]  }
  0x8a   :  { %v140_v60 = vld [vmem:[#allocation5 + $0xd8] sm:$0xff]  ;;  %v3818_v38 = vld [vmem:[#allocation8 + $0x6c] ss:$16 sps:$4 sm:$0xff]  }
  0x8b   :  { %v144_v61 = vld [vmem:[#allocation5 + $0xf8] sm:$0xff] }
  0x8c   :  { %552 = vmatpush1.bf16.msra.mxu1 %v3370_v48  ;;  %634 = vmatpush1.bf16.msra.mxu0 %v3374_v9  ;;  %v124_v48 = vld [vmem:[#allocation5 + $0x58] sm:$0xff]  ;;  %v3353_v6 = vcombine.high %v140_v60, %v144_v61  ;;  %v3352_v9 = vcombine.low %v140_v60, %v144_v61  ;;  %v3872_v60 = vld [vmem:[#allocation8 + $0x18c] ss:$16 sps:$4 sm:$0xff]   ;;  %v3870_v61 = vld [vmem:[#allocation8 + $0x188] ss:$16 sps:$4 sm:$0xff]  }
  0x8d   :  { %553 = vmatprep.subr.bf16.mxu1 %v3379_v50  ;;  %635 = vmatprep.subr.bf16.mxu0 %v3383_v11  ;;  %v3329_v50 = vcombine.high %v116_v43, %v120_v44  ;;  %v3336_v59 = vcombine.low %v124_v48, %v128_v49  ;;  %v3837_v63 = vld [vmem:[#allocation8 + $0xe0] ss:$16 sps:$4 sm:$0xff]   ;;  %v3857_v13 = vld [vmem:[#allocation8 + $0x144] ss:$16 sps:$4 sm:$0xff]   ;;  %v3828_v43 = vld [vmem:[#allocation8 + $0xa8] ss:$16 sps:$4 sm:$0xff]  }
  0x8e   :  { %v148_v4 = vld [vmem:[#allocation5 + $0x118] sm:$0xff] }
  0x8f   :  { %v152_v5 = vld [vmem:[#allocation5 + $0x138] sm:$0xff] }
  0x90   :  { %554 = vmatpush1.bf16.msra.mxu1 %v3378_v56  ;;  %636 = vmatpush1.bf16.msra.mxu0 %v3382_v15  ;;  %v3337_v56 = vcombine.high %v124_v48, %v128_v49  ;;  %v3843_v7 = vld [vmem:[#allocation8 + $0x100] ss:$16 sps:$4 sm:$0xff]   ;;  %v3361_v11 = vcombine.high %v148_v4, %v152_v5  ;;  %v3360_v14 = vcombine.low %v148_v4, %v152_v5  ;;  %v3863_v19 = vld [vmem:[#allocation8 + $0x164] ss:$16 sps:$4 sm:$0xff]   ;;  %v3840_v49 = vld [vmem:[#allocation8 + $0xe8] ss:$16 sps:$4 sm:$0xff]  }
  0x91   :  { %580 = vmatprep.subr.bf16.mxu1 %v3325_v58  ;;  %2293 = vmatprep.subr.bf16.mxu0 %v3797_v17  ;;  %v3839_v58 = vld [vmem:[#allocation8 + $0xe4] ss:$16 sps:$4 sm:$0xff]   ;;  %v3873_v32 = vld [vmem:[#allocation8 + $0x1a0] ss:$16 sps:$4 sm:$0xff]   ;;  %v3890_v4 = vld [vmem:[#allocation8 + $0x1ec] ss:$16 sps:$4 sm:$0xff]  }
  0x92   :  { %v164_v15 = vld [vmem:[#allocation5 + $0x198] sm:$0xff]  ;;  %v3888_v5 = vld [vmem:[#allocation8 + $0x1e8] ss:$16 sps:$4 sm:$0xff]  }
  0x93   :  { %572 = vmatmul.mubr.bf16.vlgmr.msra.gmra.mrb[0].mxu1 %v4599_v1  ;;  %654 = vmatmul.mubr.bf16.vlgmr.msra.gmra.mrb[0].mxu0 %v4599_v1  ;;  %v3869_v25 = vld [vmem:[#allocation8 + $0x184] ss:$16 sps:$4 sm:$0xff]  }
  0x94   :  { %581 = vmatpush1.bf16.msra.mxu1 %v3324_v2  ;;  %612 = vmatprep.mubr.bf16.mxu1 %v4473_v0  ;;  %v3845_v2 = vld [vmem:[#allocation8 + $0x104] ss:$16 sps:$4 sm:$0xff]  }
  0x95   :  { %582 = vmatprep.subr.bf16.mxu1 %v3333_v3  ;;  %2294 = vmatpush1.bf16.msra.mxu0 %v3795_v21  ;;  %v3344_v3 = vcombine.low %v132_v54, %v136_v55  ;;  %v172_v21 = vld [vmem:[#allocation5 + $0x1d8] sm:$0xff]  ;;  %v3854_v54 = vld [vmem:[#allocation8 + $0x12c] ss:$16 sps:$4 sm:$0xff]   ;;  %v3852_v55 = vld [vmem:[#allocation8 + $0x128] ss:$16 sps:$4 sm:$0xff]  }
  0x96   :  { %2295 = vmatprep.subr.bf16.mxu0 %v3803_v23  ;;  %v3881_v44 = vld [vmem:[#allocation8 + $0x1c4] ss:$16 sps:$4 sm:$0xff]  }
  0x97   :  { %v3887_v48 = vld [vmem:[#allocation8 + $0x1e4] ss:$16 sps:$4 sm:$0xff]  }
  0x98   :  { %583 = vmatpush1.bf16.msra.mxu1 %v3332_v10  ;;  %v156_v10 = vld [vmem:[#allocation5 + $0x158] sm:$0xff] }
  0x99   :  { %584 = vmatprep.subr.bf16.mxu1 %v3341_v12  ;;  %2296 = vmatpush1.bf16.msra.mxu0 %v3801_v27  ;;  %v3849_v12 = vld [vmem:[#allocation8 + $0x120] ss:$16 sps:$4 sm:$0xff]  }
  0x9a   :  { %2297 = vmatprep.subr.bf16.mxu0 %v3809_v29  ;;  %v3875_v29 = vld [vmem:[#allocation8 + $0x1a4] ss:$16 sps:$4 sm:$0xff]  }
  0x9c   :  { %585 = vmatpush1.bf16.msra.mxu1 %v3340_v16  ;;  %v168_v16 = vld [vmem:[#allocation5 + $0x1b8] sm:$0xff] }
  0x9d   :  { %586 = vmatprep.subr.bf16.mxu1 %v3349_v18  ;;  %2298 = vmatpush1.bf16.msra.mxu0 %v3807_v33  ;;  %v3855_v18 = vld [vmem:[#allocation8 + $0x140] ss:$16 sps:$4 sm:$0xff]   ;;  %v3377_v23 = vcombine.high %v164_v15, %v168_v16  ;;  %v3376_v26 = vcombine.low %v164_v15, %v168_v16  ;;  %v3798_v33 = vld [vmem:[#allocation8 + $0x8] ss:$16 sps:$4 sm:$0xff]  }
  0x9e   :  { %2299 = vmatprep.subr.bf16.mxu0 %v3815_v35  ;;  %v3804_v35 = vld [vmem:[#allocation8 + $0x28] ss:$16 sps:$4 sm:$0xff]  }
  0xa0   :  { %587 = vmatpush1.bf16.msra.mxu1 %v3348_v22  ;;  %v176_v22 = vld [vmem:[#allocation5 + $0x1f8] sm:$0xff] }
  0xa1   :  { %588 = vmatprep.subr.bf16.mxu1 %v3357_v24  ;;  %2300 = vmatpush1.bf16.msra.mxu0 %v3813_v39  ;;  %v3861_v24 = vld [vmem:[#allocation8 + $0x160] ss:$16 sps:$4 sm:$0xff]   ;;  %v3385_v27 = vcombine.high %v172_v21, %v176_v22  ;;  %v3384_v31 = vcombine.low %v172_v21, %v176_v22  ;;  %v3816_v39 = vld [vmem:[#allocation8 + $0x68] ss:$16 sps:$4 sm:$0xff]  }
  0xa2   :  { %2301 = vmatprep.subr.bf16.mxu0 %v3821_v41  ;;  %v3822_v41 = vld [vmem:[#allocation8 + $0x88] ss:$16 sps:$4 sm:$0xff]  }
  0xa4   :  { %589 = vmatpush1.bf16.msra.mxu1 %v3356_v28  ;;  %v3867_v28 = vld [vmem:[#allocation8 + $0x180] ss:$16 sps:$4 sm:$0xff]  }
  0xa5   :  { %590 = vmatprep.subr.bf16.mxu1 %v3365_v30  ;;  %2302 = vmatpush1.bf16.msra.mxu0 %v3819_v45  ;;  %v3800_v30 = vld [vmem:[#allocation8 + $0xc] ss:$16 sps:$4 sm:$0xff]   ;;  %v3834_v45 = vld [vmem:[#allocation8 + $0xc8] ss:$16 sps:$4 sm:$0xff]  }
  0xa6   :  { %2303 = vmatprep.subr.bf16.mxu0 %v3827_v46  ;;  %v3879_v46 = vld [vmem:[#allocation8 + $0x1c0] ss:$16 sps:$4 sm:$0xff]  }
  0xa8   :  { %591 = vmatpush1.bf16.msra.mxu1 %v3364_v34  ;;  %v3806_v34 = vld [vmem:[#allocation8 + $0x2c] ss:$16 sps:$4 sm:$0xff]  }
  0xa9   :  { %592 = vmatprep.subr.bf16.mxu1 %v3373_v36  ;;  %2304 = vmatpush1.bf16.msra.mxu0 %v3825_v51  ;;  %v3812_v36 = vld [vmem:[#allocation8 + $0x4c] ss:$16 sps:$4 sm:$0xff]  }
  0xaa   :  { %2305 = vmatprep.subr.bf16.mxu0 %v3833_v52  ;;  %v3848_v51 = vld [vmem:[#allocation8 + $0x10c] ss:$16 sps:$4 sm:$0xff]   ;;  %v3893_v52 = vld [vmem:[#allocation8 + $0x204] ss:$16 sps:$4 sm:$0xff]  }
  0xac   :  { %593 = vmatpush1.bf16.msra.mxu1 %v3372_v40  ;;  %v3824_v40 = vld [vmem:[#allocation8 + $0x8c] ss:$16 sps:$4 sm:$0xff]  }
  0xad   :  { %594 = vmatprep.subr.bf16.mxu1 %v3381_v42  ;;  %2306 = vmatpush1.bf16.msra.mxu0 %v3831_v57  ;;  %v3830_v42 = vld [vmem:[#allocation8 + $0xac] ss:$16 sps:$4 sm:$0xff]   ;;  %v3858_v57 = vld [vmem:[#allocation8 + $0x148] ss:$16 sps:$4 sm:$0xff]  }
  0xae   :  { %2307 = vmatprep.subr.bf16.mxu0 %v3839_v58  ;;  %v3866_v58 = vld [vmem:[#allocation8 + $0x16c] ss:$16 sps:$4 sm:$0xff]  }
  0xb0   :  { %595 = vmatpush1.bf16.msra.mxu1 %v3380_v47  ;;  %v3842_v47 = vld [vmem:[#allocation8 + $0xec] ss:$16 sps:$4 sm:$0xff]  }
  0xb1   :  { %662 = vmatprep.subr.bf16.mxu1 %v3329_v50  ;;  %2308 = vmatpush1.bf16.msra.mxu0 %v3837_v63  ;;  %v3885_v50 = vld [vmem:[#allocation8 + $0x1e0] ss:$16 sps:$4 sm:$0xff]   ;;  %v3876_v63 = vld [vmem:[#allocation8 + $0x1a8] ss:$16 sps:$4 sm:$0xff]  }
  0xb2   :  { %2309 = vmatprep.subr.bf16.mxu0 %v3845_v2  ;;  %v3884_v2 = vld [vmem:[#allocation8 + $0x1cc] ss:$16 sps:$4 sm:$0xff]  }
  0xb3   :  { %613 = vmatmul.mubr.bf16.vlgmr.msra.gmra.mrb[4].mxu1 %v4599_v1 }
  0xb4   :  { %663 = vmatpush1.bf16.msra.mxu1 %v3328_v53  ;;  %694 = vmatprep.mubr.bf16.mxu1 %v4473_v0  ;;  %v160_v0 = vld [vmem:[#allocation5 + $0x178] sm:$0xff]  ;;  %v3846_v53 = vld [vmem:[#allocation8 + $0x108] ss:$16 sps:$4 sm:$0xff]  }
  0xb5   :  { %664 = vmatprep.subr.bf16.mxu1 %v3337_v56  ;;  %2310 = vmatpush1.bf16.msra.mxu0 %v3843_v7  ;;  %v3369_v17 = vcombine.high %v156_v10, %v160_v0  ;;  %v3368_v20 = vcombine.low %v156_v10, %v160_v0  ;;  %v3860_v56 = vld [vmem:[#allocation8 + $0x14c] ss:$16 sps:$4 sm:$0xff]   ;;  %v179_v7 = vlaneseq }
  0xb6   :  { %2311 = vmatprep.subr.bf16.mxu0 %v3851_v8  ;;  %v4612_v10 = vld [vmem:[#allocation7] sm:$0xff] }
  0xb7   :  { %v4607_v8 = vshrl.u32 %v179_v7, 7  ;;  %v3939_v7 = vld [vmem:[#allocation8 + $0x300] ss:$16 sps:$4 sm:$0xff]  }
  0xb8   :  { %665 = vmatpush1.bf16.msra.mxu1 %v3336_v59  ;;  %v3864_v59 = vld [vmem:[#allocation8 + $0x168] ss:$16 sps:$4 sm:$0xff]  }
  0xb9   :  { %666 = vmatprep.subr.bf16.mxu1 %v3345_v62  ;;  %2312 = vmatpush1.bf16.msra.mxu0 %v3849_v12  ;;  %v3878_v62 = vld [vmem:[#allocation8 + $0x1ac] ss:$16 sps:$4 sm:$0xff]   ;;  %v4615_v0 = vsub.s32 1, %v4607_v8 }
  0xba   :  { %2313 = vmatprep.subr.bf16.mxu0 %v3857_v13 }
  0xbb   :  { %v186_v12 = vrot.slane %v4612_v10, %v4615_v0 }
  0xbc   :  { %667 = vmatpush1.bf16.msra.mxu1 %v3344_v3  ;;  %v3882_v3 = vld [vmem:[#allocation8 + $0x1c8] ss:$16 sps:$4 sm:$0xff]  }
  0xbd   :  { %668 = vmatprep.subr.bf16.mxu1 %v3353_v6  ;;  %2314 = vmatpush1.bf16.msra.mxu0 %v3855_v18  ;;  %v3896_v6 = vld [vmem:[#allocation8 + $0x20c] ss:$16 sps:$4 sm:$0xff]  }
  0xbe   :  { %2315 = vmatprep.subr.bf16.mxu0 %v3863_v19 }
  0xc0   :  { %669 = vmatpush1.bf16.msra.mxu1 %v3352_v9  ;;  %v4610_v9 = vsub.s32 0, %v4607_v8 }
  0xc1   :  { %670 = vmatprep.subr.bf16.mxu1 %v3361_v11  ;;  %2316 = vmatpush1.bf16.msra.mxu0 %v3861_v24  ;;  %v3891_v24 = vld [vmem:[#allocation8 + $0x200] ss:$16 sps:$4 sm:$0xff]  }
  0xc2   :  { %2317 = vmatprep.subr.bf16.mxu0 %v3869_v25  ;;  %v182_v11 = vrot.slane %v4612_v10, %v4610_v9  ;;  %v3894_v25 = vld [vmem:[#allocation8 + $0x208] ss:$16 sps:$4 sm:$0xff]  }
  0xc4   :  { %671 = vmatpush1.bf16.msra.mxu1 %v3360_v14 }
  0xc5   :  { %672 = vmatprep.subr.bf16.mxu1 %v3369_v17  ;;  %2318 = vmatpush1.bf16.msra.mxu0 %v3867_v28  ;;  %v3902_v28 = vld [vmem:[#allocation8 + $0x22c] ss:$16 sps:$4 sm:$0xff]  }
  0xc6   :  { %2319 = vmatprep.subr.bf16.mxu0 %v3875_v29  ;;  %v3897_v29 = vld [vmem:[#allocation8 + $0x220] ss:$16 sps:$4 sm:$0xff]  }
  0xc8   :  { %673 = vmatpush1.bf16.msra.mxu1 %v3368_v20 }
  0xc9   :  { %674 = vmatprep.subr.bf16.mxu1 %v3377_v23  ;;  %2320 = vmatpush1.bf16.msra.mxu0 %v3873_v32  ;;  %v3905_v32 = vld [vmem:[#allocation8 + $0x244] ss:$16 sps:$4 sm:$0xff]  }
  0xca   :  { %2321 = vmatprep.subr.bf16.mxu0 %v3881_v44  ;;  %v3915_v44 = vld [vmem:[#allocation8 + $0x280] ss:$16 sps:$4 sm:$0xff]  }
  0xcc   :  { %675 = vmatpush1.bf16.msra.mxu1 %v3376_v26 }
  0xcd   :  { %676 = vmatprep.subr.bf16.mxu1 %v3385_v27  ;;  %2322 = vmatpush1.bf16.msra.mxu0 %v3879_v46  ;;  %v3899_v27 = vld [vmem:[#allocation8 + $0x224] ss:$16 sps:$4 sm:$0xff]  }
  0xce   :  { %2323 = vmatprep.subr.bf16.mxu0 %v3887_v48  ;;  %v3923_v46 = vld [vmem:[#allocation8 + $0x2a4] ss:$16 sps:$4 sm:$0xff]   ;;  %v193_v48 = vsub.s32 3, %v4607_v8 }
  0xd0   :  { %677 = vmatpush1.bf16.msra.mxu1 %v3384_v31 }
  0xd1   :  { %2457 = vmatprep.subr.bf16.mxu1 %v3800_v30  ;;  %2324 = vmatpush1.bf16.msra.mxu0 %v3885_v50  ;;  %v3900_v30 = vld [vmem:[#allocation8 + $0x228] ss:$16 sps:$4 sm:$0xff]  }
  0xd2   :  { %2334 = vmatprep.subr.bf16.mxu0 %v3893_v52  ;;  %v3924_v50 = vld [vmem:[#allocation8 + $0x2a8] ss:$16 sps:$4 sm:$0xff]   ;;  %v3932_v52 = vld [vmem:[#allocation8 + $0x2cc] ss:$16 sps:$4 sm:$0xff]  }
  0xd3   :  { %695 = vmatmul.mubr.bf16.vlgmr.msra.gmra.mrb[8].mxu1 %v4599_v1  ;;  %v3836_v1 = vld [vmem:[#allocation8 + $0xcc] ss:$16 sps:$4 sm:$0xff]  }
  0xd4   :  { %2458 = vmatpush1.bf16.msra.mxu1 %v3798_v33  ;;  %v3908_v33 = vld [vmem:[#allocation8 + $0x24c] ss:$16 sps:$4 sm:$0xff]  }
  0xd5   :  { %2459 = vmatprep.subr.bf16.mxu1 %v3806_v34 }
  0xd8   :  { %2460 = vmatpush1.bf16.msra.mxu1 %v3804_v35 }
  0xd9   :  { %2461 = vmatprep.subr.bf16.mxu1 %v3812_v36 }
  0xdc   :  { %2462 = vmatpush1.bf16.msra.mxu1 %v3810_v37  ;;  %v3903_v37 = vld [vmem:[#allocation8 + $0x240] ss:$16 sps:$4 sm:$0xff]  }
  0xdd   :  { %2463 = vmatprep.subr.bf16.mxu1 %v3818_v38  ;;  %v3906_v38 = vld [vmem:[#allocation8 + $0x248] ss:$16 sps:$4 sm:$0xff]  }
  0xe0   :  { %2464 = vmatpush1.bf16.msra.mxu1 %v3816_v39  ;;  %v3911_v39 = vld [vmem:[#allocation8 + $0x264] ss:$16 sps:$4 sm:$0xff]  }
  0xe1   :  { %2465 = vmatprep.subr.bf16.mxu1 %v3824_v40  ;;  %v3914_v40 = vld [vmem:[#allocation8 + $0x26c] ss:$16 sps:$4 sm:$0xff]  }
  0xe4   :  { %2466 = vmatpush1.bf16.msra.mxu1 %v3822_v41  ;;  %v3909_v41 = vld [vmem:[#allocation8 + $0x260] ss:$16 sps:$4 sm:$0xff]  }
  0xe5   :  { %2467 = vmatprep.subr.bf16.mxu1 %v3830_v42  ;;  %v3912_v42 = vld [vmem:[#allocation8 + $0x268] ss:$16 sps:$4 sm:$0xff]  }
  0xe8   :  { %2468 = vmatpush1.bf16.msra.mxu1 %v3828_v43  ;;  %v3917_v43 = vld [vmem:[#allocation8 + $0x284] ss:$16 sps:$4 sm:$0xff]  }
  0xe9   :  { %2469 = vmatprep.subr.bf16.mxu1 %v3836_v1  ;;  %v3920_v1 = vld [vmem:[#allocation8 + $0x28c] ss:$16 sps:$4 sm:$0xff]  }
  0xec   :  { %2470 = vmatpush1.bf16.msra.mxu1 %v3834_v45  ;;  %v3918_v45 = vld [vmem:[#allocation8 + $0x288] ss:$16 sps:$4 sm:$0xff]  }
  0xed   :  { %2471 = vmatprep.subr.bf16.mxu1 %v3842_v47  ;;  %v3926_v47 = vld [vmem:[#allocation8 + $0x2ac] ss:$16 sps:$4 sm:$0xff]  }
  0xf0   :  { %2472 = vmatpush1.bf16.msra.mxu1 %v3840_v49  ;;  %v3921_v49 = vld [vmem:[#allocation8 + $0x2a0] ss:$16 sps:$4 sm:$0xff]  }
  0xf1   :  { %2473 = vmatprep.subr.bf16.mxu1 %v3848_v51  ;;  %v3929_v51 = vld [vmem:[#allocation8 + $0x2c4] ss:$16 sps:$4 sm:$0xff]  }
  0xf4   :  { %2474 = vmatpush1.bf16.msra.mxu1 %v3846_v53  ;;  %v194_v53 = vrot.slane %v4612_v10, %v193_v48 }
  0xf5   :  { %2475 = vmatprep.subr.bf16.mxu1 %v3854_v54  ;;  %v3927_v54 = vld [vmem:[#allocation8 + $0x2c0] ss:$16 sps:$4 sm:$0xff]  }
  0xf8   :  { %2476 = vmatpush1.bf16.msra.mxu1 %v3852_v55  ;;  %v3930_v55 = vld [vmem:[#allocation8 + $0x2c8] ss:$16 sps:$4 sm:$0xff]  }
  0xf9   :  { %2477 = vmatprep.subr.bf16.mxu1 %v3860_v56  ;;  %v3935_v56 = vld [vmem:[#allocation8 + $0x2e4] ss:$16 sps:$4 sm:$0xff]  }
  0xfc   :  { %2478 = vmatpush1.bf16.msra.mxu1 %v3858_v57  ;;  %v3938_v57 = vld [vmem:[#allocation8 + $0x2ec] ss:$16 sps:$4 sm:$0xff]  }
  0xfd   :  { %2479 = vmatprep.subr.bf16.mxu1 %v3866_v58 }
 0x100   :  { %2480 = vmatpush1.bf16.msra.mxu1 %v3864_v59 }
 0x101   :  { %2481 = vmatprep.subr.bf16.mxu1 %v3872_v60  ;;  %v3933_v60 = vld [vmem:[#allocation8 + $0x2e0] ss:$16 sps:$4 sm:$0xff]  }
 0x104   :  { %2482 = vmatpush1.bf16.msra.mxu1 %v3870_v61 }
 0x105   :  { %2483 = vmatprep.subr.bf16.mxu1 %v3878_v62 }
 0x108   :  { %2484 = vmatpush1.bf16.msra.mxu1 %v3876_v63  ;;  %v3936_v63 = vld [vmem:[#allocation8 + $0x2e8] ss:$16 sps:$4 sm:$0xff]  }
 0x109   :  { %2485 = vmatprep.subr.bf16.mxu1 %v3884_v2  ;;  %v3941_v2 = vld [vmem:[#allocation8 + $0x304] ss:$16 sps:$4 sm:$0xff]  }
 0x10c   :  { %2486 = vmatpush1.bf16.msra.mxu1 %v3882_v3 }
 0x10d   :  { %2487 = vmatprep.subr.bf16.mxu1 %v3890_v4  ;;  %v3944_v4 = vld [vmem:[#allocation8 + $0x30c] ss:$16 sps:$4 sm:$0xff]  }
 0x110   :  { %2488 = vmatpush1.bf16.msra.mxu1 %v3888_v5 }
 0x111   :  { %2498 = vmatprep.subr.bf16.mxu1 %v3896_v6 }
 0x166   :  { %v573_v13 = vpop.f32.mrb[0].mxu1  ;;  %v4621_v31 = vpop.f32.mrb[0].mxu0 }
 0x167   :  { %v574_v14 = vadd.f32 %v573_v13, %v182_v11  ;;  %v575_v15 = vpop.f32.mrb[1].mxu1  ;;  %v4623_v34 = vpop.f32.mrb[1].mxu0  ;;  %v3942_v11 = vld [vmem:[#allocation8 + $0x308] ss:$16 sps:$4 sm:$0xff]   ;;  %v3947_v13 = vld [vmem:[#allocation8 + $0x324] ss:$16 sps:$4 sm:$0xff]  }
 0x168   :  { %v576_v16 = vadd.f32 %v575_v15, %v186_v12  ;;  %v577_v17 = vpop.f32.mrb[2].mxu1  ;;  %v659_v35 = vpop.f32.mrb[2].mxu0  ;;  %v3945_v15 = vld [vmem:[#allocation8 + $0x320] ss:$16 sps:$4 sm:$0xff]  }
 0x169   :  { %vm703_vm0 = vcmp.gt.f32.partialorder %v574_v14, 0.0  ;;  %v711_v18 = vmul.f32 0.2, %v574_v14  ;;  %v578_v19 = vpop.f32.mrb[3].mxu1  ;;  %v660_v36 = vpop.f32.mrb[3].mxu0 }
 0x16a   :  { %vm704_vm1 = vcmp.gt.f32.partialorder %v576_v16, 0.0  ;;  %v712_v20 = vmul.f32 0.2, %v576_v16  ;;  %v3953_v17 = vld [vmem:[#allocation8 + $0x344] ss:$16 sps:$4 sm:$0xff]  }
 0x16b   :  { %v719_v21 = vsel %vm703_vm0, %v574_v14, %v711_v18  ;;  %v3950_v14 = vld [vmem:[#allocation8 + $0x32c] ss:$16 sps:$4 sm:$0xff]   ;;  %v3951_v19 = vld [vmem:[#allocation8 + $0x340] ss:$16 sps:$4 sm:$0xff]  }
 0x16c   :  { %v720_v22 = vsel %vm704_vm1, %v576_v16, %v712_v20  ;;  %v727_v26 = vpack.c.bf16 %v719_v21, %v719_v21  ;;  %v3948_v16 = vld [vmem:[#allocation8 + $0x328] ss:$16 sps:$4 sm:$0xff]   ;;  %v3956_v18 = vld [vmem:[#allocation8 + $0x34c] ss:$16 sps:$4 sm:$0xff]   ;;  %v3959_v21 = vld [vmem:[#allocation8 + $0x364] ss:$16 sps:$4 sm:$0xff]  }
 0x16d   :  { %v728_v23 = vpack.c.bf16 %v720_v22, %v720_v22  ;;  %v3954_v20 = vld [vmem:[#allocation8 + $0x348] ss:$16 sps:$4 sm:$0xff]   ;;  %v3962_v22 = vld [vmem:[#allocation8 + $0x36c] ss:$16 sps:$4 sm:$0xff]  }
 0x16f   :  { %2325 = vmatprep.mubr.bf16.mxu0 %v728_v23  ;;  %2489 = vmatprep.mubr.bf16.mxu1 %v728_v23  ;;  %v3957_v23 = vld [vmem:[#allocation8 + $0x360] ss:$16 sps:$4 sm:$0xff]  }
 0x170   :  { %2326 = vmatmul.mubr.bf16.vlgmr.msra.gmra.mrb[4].mxu0 %v727_v26  ;;  %2490 = vmatmul.mubr.bf16.vlgmr.msra.gmra.mrb[12].mxu1 %v727_v26  ;;  %v3968_v26 = vld [vmem:[#allocation8 + $0x38c] ss:$16 sps:$4 sm:$0xff]  }
 0x171   :  { %2335 = vmatpush1.bf16.msra.mxu0 %v3891_v24  ;;  %2499 = vmatpush1.bf16.msra.mxu1 %v3894_v25  ;;  %v3960_v24 = vld [vmem:[#allocation8 + $0x368] ss:$16 sps:$4 sm:$0xff]   ;;  %v3965_v25 = vld [vmem:[#allocation8 + $0x384] ss:$16 sps:$4 sm:$0xff]  }
 0x172   :  { %2336 = vmatprep.subr.bf16.mxu0 %v3899_v27  ;;  %2500 = vmatprep.subr.bf16.mxu1 %v3902_v28  ;;  %v189_v27 = vsub.s32 2, %v4607_v8  ;;  %v201_v28 = vsub.s32 5, %v4607_v8 }
 0x174   :  { %v190_v35 = vrot.slane %v4612_v10, %v189_v27  ;;  %v202_v36 = vrot.slane %v4612_v10, %v201_v28  ;;  %v4031_v28 = vld [vmem:[#allocation8 + $0x4e4] ss:$16 sps:$4 sm:$0xff]  }
 0x175   :  { %2337 = vmatpush1.bf16.msra.mxu0 %v3897_v29  ;;  %2501 = vmatpush1.bf16.msra.mxu1 %v3900_v30  ;;  %v3963_v29 = vld [vmem:[#allocation8 + $0x380] ss:$16 sps:$4 sm:$0xff]   ;;  %v3966_v30 = vld [vmem:[#allocation8 + $0x388] ss:$16 sps:$4 sm:$0xff]  }
 0x176   :  { %2338 = vmatprep.subr.bf16.mxu0 %v3905_v32  ;;  %2502 = vmatprep.subr.bf16.mxu1 %v3908_v33  ;;  %v3971_v32 = vld [vmem:[#allocation8 + $0x3a4] ss:$16 sps:$4 sm:$0xff]   ;;  %v3974_v33 = vld [vmem:[#allocation8 + $0x3ac] ss:$16 sps:$4 sm:$0xff]  }
 0x179   :  { %2339 = vmatpush1.bf16.msra.mxu0 %v3903_v37  ;;  %2503 = vmatpush1.bf16.msra.mxu1 %v3906_v38  ;;  %v3969_v37 = vld [vmem:[#allocation8 + $0x3a0] ss:$16 sps:$4 sm:$0xff]   ;;  %v3972_v38 = vld [vmem:[#allocation8 + $0x3a8] ss:$16 sps:$4 sm:$0xff]  }
 0x17a   :  { %2340 = vmatprep.subr.bf16.mxu0 %v3911_v39  ;;  %2504 = vmatprep.subr.bf16.mxu1 %v3914_v40  ;;  %v3977_v39 = vld [vmem:[#allocation8 + $0x3c4] ss:$16 sps:$4 sm:$0xff]   ;;  %v3980_v40 = vld [vmem:[#allocation8 + $0x3cc] ss:$16 sps:$4 sm:$0xff]  }
 0x17d   :  { %2341 = vmatpush1.bf16.msra.mxu0 %v3909_v41  ;;  %2505 = vmatpush1.bf16.msra.mxu1 %v3912_v42  ;;  %v658_v42 = vadd.f32 %v4623_v34, %v202_v36  ;;  %v3984_v34 = vld [vmem:[#allocation8 + $0x3e8] ss:$16 sps:$4 sm:$0xff]   ;;  %v4035_v36 = vld [vmem:[#allocation8 + $0x500] ss:$16 sps:$4 sm:$0xff]  }
 0x17e   :  { %2342 = vmatprep.subr.bf16.mxu0 %v3917_v43  ;;  %2506 = vmatprep.subr.bf16.mxu1 %v3920_v1  ;;  %v3975_v43 = vld [vmem:[#allocation8 + $0x3c0] ss:$16 sps:$4 sm:$0xff]   ;;  %v3978_v1 = vld [vmem:[#allocation8 + $0x3c8] ss:$16 sps:$4 sm:$0xff]  }
 0x17f   :  { %vm708_vm4 = vcmp.gt.f32.partialorder %v658_v42, 0.0 }
 0x181   :  { %2343 = vmatpush1.bf16.msra.mxu0 %v3915_v44  ;;  %2507 = vmatpush1.bf16.msra.mxu1 %v3918_v45  ;;  %v3983_v44 = vld [vmem:[#allocation8 + $0x3e4] ss:$16 sps:$4 sm:$0xff]   ;;  %v3986_v45 = vld [vmem:[#allocation8 + $0x3ec] ss:$16 sps:$4 sm:$0xff]  }
 0x182   :  { %2344 = vmatprep.subr.bf16.mxu0 %v3923_v46  ;;  %2508 = vmatprep.subr.bf16.mxu1 %v3926_v47 }
 0x185   :  { %2345 = vmatpush1.bf16.msra.mxu0 %v3921_v49  ;;  %2509 = vmatpush1.bf16.msra.mxu1 %v3924_v50  ;;  %v716_v50 = vmul.f32 0.2, %v658_v42 }
 0x186   :  { %2346 = vmatprep.subr.bf16.mxu0 %v3929_v51  ;;  %2510 = vmatprep.subr.bf16.mxu1 %v3932_v52  ;;  %v4629_v58 = vpop.f32.mrb[4].mxu1  ;;  %v3981_v52 = vld [vmem:[#allocation8 + $0x3e0] ss:$16 sps:$4 sm:$0xff]  }
 0x187   :  { %v616_v59 = vpop.f32.mrb[5].mxu1  ;;  %v615_v41 = vadd.f32 %v4629_v58, %v190_v35  ;;  %v3987_v58 = vld [vmem:[#allocation8 + $0x400] ss:$16 sps:$4 sm:$0xff]   ;;  %v4040_v35 = vld [vmem:[#allocation8 + $0x50c] ss:$16 sps:$4 sm:$0xff]  }
 0x188   :  { %v617_v61 = vadd.f32 %v616_v59, %v194_v53  ;;  %v618_v62 = vpop.f32.mrb[6].mxu1  ;;  %v3990_v59 = vld [vmem:[#allocation8 + $0x408] ss:$16 sps:$4 sm:$0xff]  }
 0x189   :  { %2347 = vmatpush1.bf16.msra.mxu0 %v3927_v54  ;;  %2511 = vmatpush1.bf16.msra.mxu1 %v3930_v55  ;;  %v619_v3 = vpop.f32.mrb[7].mxu1  ;;  %v713_v47 = vmul.f32 0.2, %v615_v41  ;;  %vm705_vm3 = vcmp.gt.f32.partialorder %v615_v41, 0.0  ;;  %v3989_v54 = vld [vmem:[#allocation8 + $0x404] ss:$16 sps:$4 sm:$0xff]  }
 0x18a   :  { %2348 = vmatprep.subr.bf16.mxu0 %v3935_v56  ;;  %2512 = vmatprep.subr.bf16.mxu1 %v3938_v57  ;;  %vm706_vm2 = vcmp.gt.f32.partialorder %v617_v61, 0.0  ;;  %v714_v5 = vmul.f32 0.2, %v617_v61  ;;  %v3992_v55 = vld [vmem:[#allocation8 + $0x40c] ss:$16 sps:$4 sm:$0xff]   ;;  %v724_v57 = vsel %vm708_vm4, %v658_v42, %v716_v50 }
 0x18b   :  { %v721_v56 = vsel %vm705_vm3, %v615_v41, %v713_v47  ;;  %v3998_v62 = vld [vmem:[#allocation8 + $0x42c] ss:$16 sps:$4 sm:$0xff]   ;;  %v3996_v3 = vld [vmem:[#allocation8 + $0x428] ss:$16 sps:$4 sm:$0xff]   ;;  %v4049_v42 = vld [vmem:[#allocation8 + $0x544] ss:$16 sps:$4 sm:$0xff]  }
 0x18c   :  { %v722_v6 = vsel %vm706_vm2, %v617_v61, %v714_v5  ;;  %v3995_v61 = vld [vmem:[#allocation8 + $0x424] ss:$16 sps:$4 sm:$0xff]   ;;  %v4004_v5 = vld [vmem:[#allocation8 + $0x44c] ss:$16 sps:$4 sm:$0xff]   ;;  %v4044_v41 = vld [vmem:[#allocation8 + $0x528] ss:$16 sps:$4 sm:$0xff]  }
 0x18d   :  { %2349 = vmatpush1.bf16.msra.mxu0 %v3933_v60  ;;  %2513 = vmatpush1.bf16.msra.mxu1 %v3936_v63  ;;  %v730_v12 = vpack.c.bf16 %v722_v6, %v722_v6  ;;  %v729_v60 = vpack.c.bf16 %v721_v56, %v721_v56  ;;  %v732_v63 = vpack.c.bf16 %v724_v57, %v724_v57  ;;  %v3999_v6 = vld [vmem:[#allocation8 + $0x440] ss:$16 sps:$4 sm:$0xff]   ;;  %v4058_v47 = vld [vmem:[#allocation8 + $0x56c] ss:$16 sps:$4 sm:$0xff]   ;;  %v4062_v56 = vld [vmem:[#allocation8 + $0x588] ss:$16 sps:$4 sm:$0xff]  }
 0x18e   :  { %2350 = vmatprep.subr.bf16.mxu0 %v3941_v2  ;;  %2514 = vmatprep.subr.bf16.mxu1 %v3944_v4  ;;  %v3993_v2 = vld [vmem:[#allocation8 + $0x420] ss:$16 sps:$4 sm:$0xff]   ;;  %v4001_v4 = vld [vmem:[#allocation8 + $0x444] ss:$16 sps:$4 sm:$0xff]  }
 0x18f   :  { %2366 = vmatprep.mubr.bf16.mxu0 %v730_v12  ;;  %2530 = vmatprep.mubr.bf16.mxu1 %v730_v12  ;;  %v4010_v12 = vld [vmem:[#allocation8 + $0x46c] ss:$16 sps:$4 sm:$0xff]   ;;  %v4053_v50 = vld [vmem:[#allocation8 + $0x560] ss:$16 sps:$4 sm:$0xff]   ;;  %v4067_v57 = vld [vmem:[#allocation8 + $0x5a4] ss:$16 sps:$4 sm:$0xff]  }
 0x191   :  { %2351 = vmatpush1.bf16.msra.mxu0 %v3939_v7  ;;  %2515 = vmatpush1.bf16.msra.mxu1 %v3942_v11  ;;  %v4002_v7 = vld [vmem:[#allocation8 + $0x448] ss:$16 sps:$4 sm:$0xff]   ;;  %v4007_v11 = vld [vmem:[#allocation8 + $0x464] ss:$16 sps:$4 sm:$0xff]  }
 0x192   :  { %2352 = vmatprep.subr.bf16.mxu0 %v3947_v13  ;;  %2516 = vmatprep.subr.bf16.mxu1 %v3950_v14  ;;  %v4005_v13 = vld [vmem:[#allocation8 + $0x460] ss:$16 sps:$4 sm:$0xff]   ;;  %v4008_v14 = vld [vmem:[#allocation8 + $0x468] ss:$16 sps:$4 sm:$0xff]  }
 0x195   :  { %2353 = vmatpush1.bf16.msra.mxu0 %v3945_v15  ;;  %2517 = vmatpush1.bf16.msra.mxu1 %v3948_v16  ;;  %v4013_v15 = vld [vmem:[#allocation8 + $0x484] ss:$16 sps:$4 sm:$0xff]   ;;  %v4016_v16 = vld [vmem:[#allocation8 + $0x48c] ss:$16 sps:$4 sm:$0xff]  }
 0x196   :  { %2354 = vmatprep.subr.bf16.mxu0 %v3953_v17  ;;  %2518 = vmatprep.subr.bf16.mxu1 %v3956_v18  ;;  %v4011_v17 = vld [vmem:[#allocation8 + $0x480] ss:$16 sps:$4 sm:$0xff]   ;;  %v4014_v18 = vld [vmem:[#allocation8 + $0x488] ss:$16 sps:$4 sm:$0xff]  }
 0x199   :  { %2355 = vmatpush1.bf16.msra.mxu0 %v3951_v19  ;;  %2519 = vmatpush1.bf16.msra.mxu1 %v3954_v20  ;;  %v4019_v19 = vld [vmem:[#allocation8 + $0x4a4] ss:$16 sps:$4 sm:$0xff]   ;;  %v4022_v20 = vld [vmem:[#allocation8 + $0x4ac] ss:$16 sps:$4 sm:$0xff]  }
 0x19a   :  { %2356 = vmatprep.subr.bf16.mxu0 %v3959_v21  ;;  %2520 = vmatprep.subr.bf16.mxu1 %v3962_v22  ;;  %v4017_v21 = vld [vmem:[#allocation8 + $0x4a0] ss:$16 sps:$4 sm:$0xff]   ;;  %v4020_v22 = vld [vmem:[#allocation8 + $0x4a8] ss:$16 sps:$4 sm:$0xff]  }
 0x19d   :  { %2357 = vmatpush1.bf16.msra.mxu0 %v3957_v23  ;;  %2521 = vmatpush1.bf16.msra.mxu1 %v3960_v24  ;;  %v4025_v23 = vld [vmem:[#allocation8 + $0x4c4] ss:$16 sps:$4 sm:$0xff]   ;;  %v4028_v24 = vld [vmem:[#allocation8 + $0x4cc] ss:$16 sps:$4 sm:$0xff]  }
 0x19e   :  { %2358 = vmatprep.subr.bf16.mxu0 %v3965_v25  ;;  %2522 = vmatprep.subr.bf16.mxu1 %v3968_v26  ;;  %v4023_v25 = vld [vmem:[#allocation8 + $0x4c0] ss:$16 sps:$4 sm:$0xff]   ;;  %v4026_v26 = vld [vmem:[#allocation8 + $0x4c8] ss:$16 sps:$4 sm:$0xff]  }
 0x1a1   :  { %2359 = vmatpush1.bf16.msra.mxu0 %v3963_v29  ;;  %2523 = vmatpush1.bf16.msra.mxu1 %v3966_v30  ;;  %v4034_v29 = vld [vmem:[#allocation8 + $0x4ec] ss:$16 sps:$4 sm:$0xff]   ;;  %v4029_v30 = vld [vmem:[#allocation8 + $0x4e0] ss:$16 sps:$4 sm:$0xff]  }
 0x1a2   :  { %2360 = vmatprep.subr.bf16.mxu0 %v3971_v32  ;;  %2524 = vmatprep.subr.bf16.mxu1 %v3974_v33  ;;  %v4032_v32 = vld [vmem:[#allocation8 + $0x4e8] ss:$16 sps:$4 sm:$0xff]   ;;  %v4037_v33 = vld [vmem:[#allocation8 + $0x504] ss:$16 sps:$4 sm:$0xff]  }
 0x1a5   :  { %2361 = vmatpush1.bf16.msra.mxu0 %v3969_v37  ;;  %2525 = vmatpush1.bf16.msra.mxu1 %v3972_v38  ;;  %v4038_v37 = vld [vmem:[#allocation8 + $0x508] ss:$16 sps:$4 sm:$0xff]   ;;  %v4043_v38 = vld [vmem:[#allocation8 + $0x524] ss:$16 sps:$4 sm:$0xff]  }
 0x1a6   :  { %2362 = vmatprep.subr.bf16.mxu0 %v3977_v39  ;;  %2526 = vmatprep.subr.bf16.mxu1 %v3980_v40  ;;  %v4639_v46 = vpop.f32.mrb[8].mxu1  ;;  %v4046_v39 = vld [vmem:[#allocation8 + $0x52c] ss:$16 sps:$4 sm:$0xff]   ;;  %v4041_v40 = vld [vmem:[#allocation8 + $0x520] ss:$16 sps:$4 sm:$0xff]  }
 0x1a7   :  { %v4641_v49 = vpop.f32.mrb[9].mxu1 }
 0x1a8   :  { %v700_v51 = vpop.f32.mrb[10].mxu1 }
 0x1a9   :  { %2363 = vmatpush1.bf16.msra.mxu0 %v3975_v43  ;;  %2527 = vmatpush1.bf16.msra.mxu1 %v3978_v1  ;;  %v701_v53 = vpop.f32.mrb[11].mxu1  ;;  %v4052_v43 = vld [vmem:[#allocation8 + $0x54c] ss:$16 sps:$4 sm:$0xff]   ;;  %v4047_v1 = vld [vmem:[#allocation8 + $0x540] ss:$16 sps:$4 sm:$0xff]  }
 0x1aa   :  { %2364 = vmatprep.subr.bf16.mxu0 %v3983_v44  ;;  %2528 = vmatprep.subr.bf16.mxu1 %v3986_v45  ;;  %v4050_v44 = vld [vmem:[#allocation8 + $0x548] ss:$16 sps:$4 sm:$0xff]   ;;  %v4055_v45 = vld [vmem:[#allocation8 + $0x564] ss:$16 sps:$4 sm:$0xff]   ;;  %v197_v53 = vsub.s32 4, %v4607_v8 }
 0x1ab   :  { %v4056_v51 = vld [vmem:[#allocation8 + $0x568] ss:$16 sps:$4 sm:$0xff]  }
 0x1ad   :  { %2365 = vmatpush1.bf16.msra.mxu0 %v3981_v52  ;;  %2529 = vmatpush1.bf16.msra.mxu1 %v3984_v34  ;;  %v4061_v52 = vld [vmem:[#allocation8 + $0x584] ss:$16 sps:$4 sm:$0xff]   ;;  %v4064_v34 = vld [vmem:[#allocation8 + $0x58c] ss:$16 sps:$4 sm:$0xff]  }
 0x1ae   :  { %2375 = vmatprep.subr.bf16.mxu0 %v3989_v54  ;;  %2539 = vmatprep.subr.bf16.mxu1 %v3992_v55  ;;  %v209_v54 = vsub.s32 7, %v4607_v8  ;;  %v4059_v55 = vld [vmem:[#allocation8 + $0x580] ss:$16 sps:$4 sm:$0xff]  }
 0x1b0   :  { %2367 = vmatmul.mubr.bf16.vlgmr.msra.gmra.mrb[4].mxu0 %v729_v60  ;;  %2531 = vmatmul.mubr.bf16.vlgmr.msra.gmra.mrb[12].mxu1 %v729_v60  ;;  %v210_v60 = vrot.slane %v4612_v10, %v209_v54  ;;  %v4133_v54 = vld [vmem:[#allocation8 + $0x704] ss:$16 sps:$4 sm:$0xff]  }
 0x1b1   :  { %2376 = vmatpush1.bf16.msra.mxu0 %v3987_v58  ;;  %2540 = vmatpush1.bf16.msra.mxu1 %v3990_v59  ;;  %v4070_v58 = vld [vmem:[#allocation8 + $0x5ac] ss:$16 sps:$4 sm:$0xff]   ;;  %v198_v59 = vrot.slane %v4612_v10, %v197_v53  ;;  %v4128_v53 = vld [vmem:[#allocation8 + $0x6e8] ss:$16 sps:$4 sm:$0xff]  }
 0x1b2   :  { %2377 = vmatprep.subr.bf16.mxu0 %v3995_v61  ;;  %2541 = vmatprep.subr.bf16.mxu1 %v3998_v62  ;;  %v4065_v61 = vld [vmem:[#allocation8 + $0x5a0] ss:$16 sps:$4 sm:$0xff]   ;;  %v4068_v62 = vld [vmem:[#allocation8 + $0x5a8] ss:$16 sps:$4 sm:$0xff]  }
 0x1b3   :  { %2407 = vmatprep.mubr.bf16.mxu0 %v732_v63  ;;  %2571 = vmatprep.mubr.bf16.mxu1 %v732_v63  ;;  %v4073_v63 = vld [vmem:[#allocation8 + $0x5c4] ss:$16 sps:$4 sm:$0xff]  }
 0x1b5   :  { %2378 = vmatpush1.bf16.msra.mxu0 %v3993_v2  ;;  %2542 = vmatpush1.bf16.msra.mxu1 %v3996_v3  ;;  %v4076_v2 = vld [vmem:[#allocation8 + $0x5cc] ss:$16 sps:$4 sm:$0xff]   ;;  %v656_v3 = vadd.f32 %v4621_v31, %v198_v59  ;;  %v4085_v31 = vld [vmem:[#allocation8 + $0x604] ss:$16 sps:$4 sm:$0xff]  }
 0x1b6   :  { %2379 = vmatprep.subr.bf16.mxu0 %v4001_v4  ;;  %2543 = vmatprep.subr.bf16.mxu1 %v4004_v5  ;;  %v699_v4 = vadd.f32 %v4641_v49, %v210_v60  ;;  %v4071_v5 = vld [vmem:[#allocation8 + $0x5c0] ss:$16 sps:$4 sm:$0xff]   ;;  %v4088_v49 = vld [vmem:[#allocation8 + $0x60c] ss:$16 sps:$4 sm:$0xff]  }
 0x1b7   :  { %vm707_vm5 = vcmp.gt.f32.partialorder %v656_v3, 0.0  ;;  %v4142_v59 = vld [vmem:[#allocation8 + $0x72c] ss:$16 sps:$4 sm:$0xff]   ;;  %v4137_v60 = vld [vmem:[#allocation8 + $0x720] ss:$16 sps:$4 sm:$0xff]  }
 0x1b8   :  { %vm710_vm6 = vcmp.gt.f32.partialorder %v699_v4, 0.0 }
 0x1b9   :  { %2380 = vmatpush1.bf16.msra.mxu0 %v3999_v6  ;;  %2544 = vmatpush1.bf16.msra.mxu1 %v4002_v7  ;;  %v4074_v6 = vld [vmem:[#allocation8 + $0x5c8] ss:$16 sps:$4 sm:$0xff]   ;;  %v4079_v7 = vld [vmem:[#allocation8 + $0x5e4] ss:$16 sps:$4 sm:$0xff]  }
 0x1ba   :  { %2381 = vmatprep.subr.bf16.mxu0 %v4007_v11  ;;  %2545 = vmatprep.subr.bf16.mxu1 %v4010_v12  ;;  %v4082_v11 = vld [vmem:[#allocation8 + $0x5ec] ss:$16 sps:$4 sm:$0xff]   ;;  %v715_v12 = vmul.f32 0.2, %v656_v3 }
 0x1bd   :  { %2382 = vmatpush1.bf16.msra.mxu0 %v4005_v13  ;;  %2546 = vmatpush1.bf16.msra.mxu1 %v4008_v14  ;;  %v718_v13 = vmul.f32 0.2, %v699_v4  ;;  %v4077_v14 = vld [vmem:[#allocation8 + $0x5e0] ss:$16 sps:$4 sm:$0xff]  }
 0x1be   :  { %2383 = vmatprep.subr.bf16.mxu0 %v4013_v15  ;;  %2547 = vmatprep.subr.bf16.mxu1 %v4016_v16  ;;  %v4080_v15 = vld [vmem:[#allocation8 + $0x5e8] ss:$16 sps:$4 sm:$0xff]   ;;  %v723_v16 = vsel %vm707_vm5, %v656_v3, %v715_v12  ;;  %v4160_v12 = vld [vmem:[#allocation8 + $0x78c] ss:$16 sps:$4 sm:$0xff]  }
 0x1bf   :  { %v4146_v3 = vld [vmem:[#allocation8 + $0x748] ss:$16 sps:$4 sm:$0xff]  }
 0x1c1   :  { %2384 = vmatpush1.bf16.msra.mxu0 %v4011_v17  ;;  %2548 = vmatpush1.bf16.msra.mxu1 %v4014_v18  ;;  %v726_v17 = vsel %vm710_vm6, %v699_v4, %v718_v13  ;;  %v4083_v18 = vld [vmem:[#allocation8 + $0x600] ss:$16 sps:$4 sm:$0xff]   ;;  %v4151_v4 = vld [vmem:[#allocation8 + $0x764] ss:$16 sps:$4 sm:$0xff]   ;;  %v205_v13 = vsub.s32 6, %v4607_v8 }
 0x1c2   :  { %2385 = vmatprep.subr.bf16.mxu0 %v4019_v19  ;;  %2549 = vmatprep.subr.bf16.mxu1 %v4022_v20  ;;  %v4086_v19 = vld [vmem:[#allocation8 + $0x608] ss:$16 sps:$4 sm:$0xff]   ;;  %v731_v20 = vpack.c.bf16 %v723_v16, %v723_v16 }
 0x1c3   :  { %v206_v16 = vrot.slane %v4612_v10, %v205_v13  ;;  %v4173_v10 = vld [vmem:[#allocation8 + $0x7e0] ss:$16 sps:$4 sm:$0xff]   ;;  %v4281_v13 = vld [vmem:[#allocation11 + $0x58] sm:$0xff]  }
 0x1c5   :  { %2386 = vmatpush1.bf16.msra.mxu0 %v4017_v21  ;;  %2550 = vmatpush1.bf16.msra.mxu1 %v4020_v22  ;;  %v4091_v21 = vld [vmem:[#allocation8 + $0x624] ss:$16 sps:$4 sm:$0xff]   ;;  %v4094_v22 = vld [vmem:[#allocation8 + $0x62c] ss:$16 sps:$4 sm:$0xff]  }
 0x1c6   :  { %2387 = vmatprep.subr.bf16.mxu0 %v4025_v23  ;;  %2551 = vmatprep.subr.bf16.mxu1 %v4028_v24  ;;  %v734_v23 = vpack.c.bf16 %v726_v17, %v726_v17  ;;  %v4089_v24 = vld [vmem:[#allocation8 + $0x620] ss:$16 sps:$4 sm:$0xff]  }
 0x1c7   :  { %v4161_v17 = vld [vmem:[#allocation8 + $0x7a0] ss:$16 sps:$4 sm:$0xff]  }
 0x1c9   :  { %2388 = vmatpush1.bf16.msra.mxu0 %v4023_v25  ;;  %2552 = vmatpush1.bf16.msra.mxu1 %v4026_v26  ;;  %v4092_v25 = vld [vmem:[#allocation8 + $0x628] ss:$16 sps:$4 sm:$0xff]   ;;  %v4097_v26 = vld [vmem:[#allocation8 + $0x644] ss:$16 sps:$4 sm:$0xff]  }
 0x1ca   :  { %2389 = vmatprep.subr.bf16.mxu0 %v4031_v28  ;;  %2553 = vmatprep.subr.bf16.mxu1 %v4034_v29  ;;  %v4100_v28 = vld [vmem:[#allocation8 + $0x64c] ss:$16 sps:$4 sm:$0xff]   ;;  %v4095_v29 = vld [vmem:[#allocation8 + $0x640] ss:$16 sps:$4 sm:$0xff]  }
 0x1cd   :  { %2390 = vmatpush1.bf16.msra.mxu0 %v4029_v30  ;;  %2554 = vmatpush1.bf16.msra.mxu1 %v4032_v32  ;;  %v4098_v30 = vld [vmem:[#allocation8 + $0x648] ss:$16 sps:$4 sm:$0xff]   ;;  %v4103_v32 = vld [vmem:[#allocation8 + $0x664] ss:$16 sps:$4 sm:$0xff]  }
 0x1ce   :  { %2391 = vmatprep.subr.bf16.mxu0 %v4037_v33  ;;  %2555 = vmatprep.subr.bf16.mxu1 %v4040_v35  ;;  %v4106_v33 = vld [vmem:[#allocation8 + $0x66c] ss:$16 sps:$4 sm:$0xff]   ;;  %v4101_v35 = vld [vmem:[#allocation8 + $0x660] ss:$16 sps:$4 sm:$0xff]  }
 0x1d1   :  { %2392 = vmatpush1.bf16.msra.mxu0 %v4035_v36  ;;  %2556 = vmatpush1.bf16.msra.mxu1 %v4038_v37  ;;  %v4104_v36 = vld [vmem:[#allocation8 + $0x668] ss:$16 sps:$4 sm:$0xff]   ;;  %v4109_v37 = vld [vmem:[#allocation8 + $0x684] ss:$16 sps:$4 sm:$0xff]  }
 0x1d2   :  { %2393 = vmatprep.subr.bf16.mxu0 %v4043_v38  ;;  %2557 = vmatprep.subr.bf16.mxu1 %v4046_v39  ;;  %v4112_v38 = vld [vmem:[#allocation8 + $0x68c] ss:$16 sps:$4 sm:$0xff]   ;;  %v4107_v39 = vld [vmem:[#allocation8 + $0x680] ss:$16 sps:$4 sm:$0xff]  }
 0x1d5   :  { %2394 = vmatpush1.bf16.msra.mxu0 %v4041_v40  ;;  %2558 = vmatpush1.bf16.msra.mxu1 %v4044_v41  ;;  %v4110_v40 = vld [vmem:[#allocation8 + $0x688] ss:$16 sps:$4 sm:$0xff]   ;;  %v4115_v41 = vld [vmem:[#allocation8 + $0x6a4] ss:$16 sps:$4 sm:$0xff]  }
 0x1d6   :  { %2395 = vmatprep.subr.bf16.mxu0 %v4049_v42  ;;  %2559 = vmatprep.subr.bf16.mxu1 %v4052_v43  ;;  %v4118_v42 = vld [vmem:[#allocation8 + $0x6ac] ss:$16 sps:$4 sm:$0xff]   ;;  %v4113_v43 = vld [vmem:[#allocation8 + $0x6a0] ss:$16 sps:$4 sm:$0xff]  }
 0x1d9   :  { %2396 = vmatpush1.bf16.msra.mxu0 %v4047_v1  ;;  %2560 = vmatpush1.bf16.msra.mxu1 %v4050_v44  ;;  %v4116_v1 = vld [vmem:[#allocation8 + $0x6a8] ss:$16 sps:$4 sm:$0xff]   ;;  %v4121_v44 = vld [vmem:[#allocation8 + $0x6c4] ss:$16 sps:$4 sm:$0xff]  }
 0x1da   :  { %2397 = vmatprep.subr.bf16.mxu0 %v4055_v45  ;;  %2561 = vmatprep.subr.bf16.mxu1 %v4058_v47  ;;  %v4124_v45 = vld [vmem:[#allocation8 + $0x6cc] ss:$16 sps:$4 sm:$0xff]   ;;  %v4119_v47 = vld [vmem:[#allocation8 + $0x6c0] ss:$16 sps:$4 sm:$0xff]  }
 0x1dd   :  { %2398 = vmatpush1.bf16.msra.mxu0 %v4053_v50  ;;  %2562 = vmatpush1.bf16.msra.mxu1 %v4056_v51  ;;  %v4122_v50 = vld [vmem:[#allocation8 + $0x6c8] ss:$16 sps:$4 sm:$0xff]   ;;  %v4127_v51 = vld [vmem:[#allocation8 + $0x6e4] ss:$16 sps:$4 sm:$0xff]  }
 0x1de   :  { %2399 = vmatprep.subr.bf16.mxu0 %v4061_v52  ;;  %2563 = vmatprep.subr.bf16.mxu1 %v4064_v34  ;;  %v4130_v52 = vld [vmem:[#allocation8 + $0x6ec] ss:$16 sps:$4 sm:$0xff]   ;;  %v4125_v34 = vld [vmem:[#allocation8 + $0x6e0] ss:$16 sps:$4 sm:$0xff]  }
 0x1e1   :  { %2400 = vmatpush1.bf16.msra.mxu0 %v4059_v55  ;;  %2564 = vmatpush1.bf16.msra.mxu1 %v4062_v56  ;;  %v4136_v55 = vld [vmem:[#allocation8 + $0x70c] ss:$16 sps:$4 sm:$0xff]   ;;  %v4131_v56 = vld [vmem:[#allocation8 + $0x700] ss:$16 sps:$4 sm:$0xff]  }
 0x1e2   :  { %2401 = vmatprep.subr.bf16.mxu0 %v4067_v57  ;;  %2565 = vmatprep.subr.bf16.mxu1 %v4070_v58  ;;  %v4134_v57 = vld [vmem:[#allocation8 + $0x708] ss:$16 sps:$4 sm:$0xff]   ;;  %v4139_v58 = vld [vmem:[#allocation8 + $0x724] ss:$16 sps:$4 sm:$0xff]  }
 0x1e5   :  { %2402 = vmatpush1.bf16.msra.mxu0 %v4065_v61  ;;  %2566 = vmatpush1.bf16.msra.mxu1 %v4068_v62  ;;  %v4140_v61 = vld [vmem:[#allocation8 + $0x728] ss:$16 sps:$4 sm:$0xff]   ;;  %v4145_v62 = vld [vmem:[#allocation8 + $0x744] ss:$16 sps:$4 sm:$0xff]  }
 0x1e6   :  { %2403 = vmatprep.subr.bf16.mxu0 %v4073_v63  ;;  %2567 = vmatprep.subr.bf16.mxu1 %v4076_v2  ;;  %v4148_v63 = vld [vmem:[#allocation8 + $0x74c] ss:$16 sps:$4 sm:$0xff]   ;;  %v4143_v2 = vld [vmem:[#allocation8 + $0x740] ss:$16 sps:$4 sm:$0xff]  }
 0x1e9   :  { %2404 = vmatpush1.bf16.msra.mxu0 %v4071_v5  ;;  %2568 = vmatpush1.bf16.msra.mxu1 %v4074_v6  ;;  %v4154_v5 = vld [vmem:[#allocation8 + $0x76c] ss:$16 sps:$4 sm:$0xff]   ;;  %v4149_v6 = vld [vmem:[#allocation8 + $0x760] ss:$16 sps:$4 sm:$0xff]  }
 0x1ea   :  { %2405 = vmatprep.subr.bf16.mxu0 %v4079_v7  ;;  %2569 = vmatprep.subr.bf16.mxu1 %v4082_v11  ;;  %v4152_v7 = vld [vmem:[#allocation8 + $0x768] ss:$16 sps:$4 sm:$0xff]   ;;  %v4157_v11 = vld [vmem:[#allocation8 + $0x784] ss:$16 sps:$4 sm:$0xff]  }
 0x1ed   :  { %2406 = vmatpush1.bf16.msra.mxu0 %v4077_v14  ;;  %2570 = vmatpush1.bf16.msra.mxu1 %v4080_v15  ;;  %v4155_v14 = vld [vmem:[#allocation8 + $0x780] ss:$16 sps:$4 sm:$0xff]   ;;  %v4158_v15 = vld [vmem:[#allocation8 + $0x788] ss:$16 sps:$4 sm:$0xff]  }
 0x1ee   :  { %2416 = vmatprep.subr.bf16.mxu0 %v4085_v31  ;;  %2580 = vmatprep.subr.bf16.mxu1 %v4088_v49  ;;  %v4163_v31 = vld [vmem:[#allocation8 + $0x7a4] ss:$16 sps:$4 sm:$0xff]   ;;  %v4166_v49 = vld [vmem:[#allocation8 + $0x7ac] ss:$16 sps:$4 sm:$0xff]  }
 0x1f0   :  { %2408 = vmatmul.mubr.bf16.vlgmr.msra.gmra.mrb[4].mxu0 %v731_v20  ;;  %2572 = vmatmul.mubr.bf16.vlgmr.msra.gmra.mrb[12].mxu1 %v731_v20  ;;  %v4172_v20 = vld [vmem:[#allocation8 + $0x7cc] ss:$16 sps:$4 sm:$0xff]  }
 0x1f1   :  { %2417 = vmatpush1.bf16.msra.mxu0 %v4083_v18  ;;  %2581 = vmatpush1.bf16.msra.mxu1 %v4086_v19  ;;  %v4164_v18 = vld [vmem:[#allocation8 + $0x7a8] ss:$16 sps:$4 sm:$0xff]   ;;  %v4169_v19 = vld [vmem:[#allocation8 + $0x7c4] ss:$16 sps:$4 sm:$0xff]  }
 0x1f2   :  { %2418 = vmatprep.subr.bf16.mxu0 %v4091_v21  ;;  %2582 = vmatprep.subr.bf16.mxu1 %v4094_v22  ;;  %v697_v21 = vadd.f32 %v4639_v46, %v206_v16  ;;  %v4167_v22 = vld [vmem:[#allocation8 + $0x7c0] ss:$16 sps:$4 sm:$0xff]   ;;  %v4286_v16 = vld [vmem:[#allocation11 + $0x28] sm:$0xff]  }
 0x1f3   :  { %2448 = vmatprep.mubr.bf16.mxu0 %v734_v23  ;;  %2612 = vmatprep.mubr.bf16.mxu1 %v734_v23  ;;  %v4170_v23 = vld [vmem:[#allocation8 + $0x7c8] ss:$16 sps:$4 sm:$0xff]  }
 0x1f4   :  { %vm709_vm7 = vcmp.gt.f32.partialorder %v697_v21, 0.0  ;;  %v4179_v46 = vld [vmem:[#allocation10] ss:$8 sps:$4 sm:$0xff]  }
 0x1f5   :  { %2419 = vmatpush1.bf16.msra.mxu0 %v4089_v24  ;;  %2583 = vmatpush1.bf16.msra.mxu1 %v4092_v25  ;;  %v4175_v24 = vld [vmem:[#allocation8 + $0x7e4] ss:$16 sps:$4 sm:$0xff]   ;;  %v4178_v25 = vld [vmem:[#allocation8 + $0x7ec] ss:$16 sps:$4 sm:$0xff]  }
 0x1f6   :  { %2420 = vmatprep.subr.bf16.mxu0 %v4097_v26  ;;  %2584 = vmatprep.subr.bf16.mxu1 %v4100_v28  ;;  %v717_v26 = vmul.f32 0.2, %v697_v21  ;;  %v4176_v28 = vld [vmem:[#allocation8 + $0x7e8] ss:$16 sps:$4 sm:$0xff]  }
 0x1f9   :  { %2421 = vmatpush1.bf16.msra.mxu0 %v4095_v29  ;;  %2585 = vmatpush1.bf16.msra.mxu1 %v4098_v30  ;;  %v4181_v29 = vld [vmem:[#allocation10 + $0x4] ss:$8 sps:$4 sm:$0xff]   ;;  %v725_v30 = vsel %vm709_vm7, %v697_v21, %v717_v26 }
 0x1fa   :  { %2422 = vmatprep.subr.bf16.mxu0 %v4103_v32  ;;  %2586 = vmatprep.subr.bf16.mxu1 %v4106_v33  ;;  %v733_v32 = vpack.c.bf16 %v725_v30, %v725_v30  ;;  %v4184_v33 = vld [vmem:[#allocation10 + $0x14] ss:$8 sps:$4 sm:$0xff]  }
 0x1fd   :  { %2423 = vmatpush1.bf16.msra.mxu0 %v4101_v35  ;;  %2587 = vmatpush1.bf16.msra.mxu1 %v4104_v36  ;;  %v4182_v35 = vld [vmem:[#allocation10 + $0x10] ss:$8 sps:$4 sm:$0xff]   ;;  %v4187_v36 = vld [vmem:[#allocation10 + $0x24] ss:$8 sps:$4 sm:$0xff]  }
 0x1fe   :  { %2424 = vmatprep.subr.bf16.mxu0 %v4109_v37  ;;  %2588 = vmatprep.subr.bf16.mxu1 %v4112_v38  ;;  %v4185_v37 = vld [vmem:[#allocation10 + $0x20] ss:$8 sps:$4 sm:$0xff]   ;;  %v4190_v38 = vld [vmem:[#allocation10 + $0x34] ss:$8 sps:$4 sm:$0xff]  }
 0x201   :  { %2425 = vmatpush1.bf16.msra.mxu0 %v4107_v39  ;;  %2589 = vmatpush1.bf16.msra.mxu1 %v4110_v40  ;;  %v4188_v39 = vld [vmem:[#allocation10 + $0x30] ss:$8 sps:$4 sm:$0xff]   ;;  %v4193_v40 = vld [vmem:[#allocation10 + $0x44] ss:$8 sps:$4 sm:$0xff]  }
 0x202   :  { %2426 = vmatprep.subr.bf16.mxu0 %v4115_v41  ;;  %2590 = vmatprep.subr.bf16.mxu1 %v4118_v42  ;;  %v4191_v41 = vld [vmem:[#allocation10 + $0x40] ss:$8 sps:$4 sm:$0xff]   ;;  %v4196_v42 = vld [vmem:[#allocation10 + $0x54] ss:$8 sps:$4 sm:$0xff]  }
 0x205   :  { %2427 = vmatpush1.bf16.msra.mxu0 %v4113_v43  ;;  %2591 = vmatpush1.bf16.msra.mxu1 %v4116_v1  ;;  %v4194_v43 = vld [vmem:[#allocation10 + $0x50] ss:$8 sps:$4 sm:$0xff]   ;;  %v4199_v1 = vld [vmem:[#allocation10 + $0x64] ss:$8 sps:$4 sm:$0xff]  }
 0x206   :  { %2428 = vmatprep.subr.bf16.mxu0 %v4121_v44  ;;  %2592 = vmatprep.subr.bf16.mxu1 %v4124_v45  ;;  %v4197_v44 = vld [vmem:[#allocation10 + $0x60] ss:$8 sps:$4 sm:$0xff]   ;;  %v4202_v45 = vld [vmem:[#allocation10 + $0x74] ss:$8 sps:$4 sm:$0xff]  }
 0x209   :  { %2429 = vmatpush1.bf16.msra.mxu0 %v4119_v47  ;;  %2593 = vmatpush1.bf16.msra.mxu1 %v4122_v50  ;;  %v4200_v47 = vld [vmem:[#allocation10 + $0x70] ss:$8 sps:$4 sm:$0xff]   ;;  %v4205_v50 = vld [vmem:[#allocation10 + $0x84] ss:$8 sps:$4 sm:$0xff]  }
 0x20a   :  { %2430 = vmatprep.subr.bf16.mxu0 %v4127_v51  ;;  %2594 = vmatprep.subr.bf16.mxu1 %v4130_v52  ;;  %v4203_v51 = vld [vmem:[#allocation10 + $0x80] ss:$8 sps:$4 sm:$0xff]   ;;  %v4208_v52 = vld [vmem:[#allocation10 + $0x94] ss:$8 sps:$4 sm:$0xff]  }
 0x20d   :  { %2431 = vmatpush1.bf16.msra.mxu0 %v4125_v34  ;;  %2595 = vmatpush1.bf16.msra.mxu1 %v4128_v53  ;;  %v4206_v34 = vld [vmem:[#allocation10 + $0x90] ss:$8 sps:$4 sm:$0xff]   ;;  %v4211_v53 = vld [vmem:[#allocation10 + $0xa4] ss:$8 sps:$4 sm:$0xff]  }
 0x20e   :  { %2432 = vmatprep.subr.bf16.mxu0 %v4133_v54  ;;  %2596 = vmatprep.subr.bf16.mxu1 %v4136_v55  ;;  %v4209_v54 = vld [vmem:[#allocation10 + $0xa0] ss:$8 sps:$4 sm:$0xff]   ;;  %v4214_v55 = vld [vmem:[#allocation10 + $0xb4] ss:$8 sps:$4 sm:$0xff]  }
 0x211   :  { %2433 = vmatpush1.bf16.msra.mxu0 %v4131_v56  ;;  %2597 = vmatpush1.bf16.msra.mxu1 %v4134_v57  ;;  %v4212_v56 = vld [vmem:[#allocation10 + $0xb0] ss:$8 sps:$4 sm:$0xff]   ;;  %v4217_v57 = vld [vmem:[#allocation10 + $0xc4] ss:$8 sps:$4 sm:$0xff]  }
 0x212   :  { %2434 = vmatprep.subr.bf16.mxu0 %v4139_v58  ;;  %2598 = vmatprep.subr.bf16.mxu1 %v4142_v59  ;;  %v4215_v58 = vld [vmem:[#allocation10 + $0xc0] ss:$8 sps:$4 sm:$0xff]   ;;  %v4220_v59 = vld [vmem:[#allocation10 + $0xd4] ss:$8 sps:$4 sm:$0xff]  }
 0x215   :  { %2435 = vmatpush1.bf16.msra.mxu0 %v4137_v60  ;;  %2599 = vmatpush1.bf16.msra.mxu1 %v4140_v61  ;;  %v4218_v60 = vld [vmem:[#allocation10 + $0xd0] ss:$8 sps:$4 sm:$0xff]   ;;  %v4223_v61 = vld [vmem:[#allocation10 + $0xe4] ss:$8 sps:$4 sm:$0xff]  }
 0x216   :  { %2436 = vmatprep.subr.bf16.mxu0 %v4145_v62  ;;  %2600 = vmatprep.subr.bf16.mxu1 %v4148_v63  ;;  %v4221_v62 = vld [vmem:[#allocation10 + $0xe0] ss:$8 sps:$4 sm:$0xff]   ;;  %v4226_v63 = vld [vmem:[#allocation10 + $0xf4] ss:$8 sps:$4 sm:$0xff]  }
 0x219   :  { %2437 = vmatpush1.bf16.msra.mxu0 %v4143_v2  ;;  %2601 = vmatpush1.bf16.msra.mxu1 %v4146_v3  ;;  %v4224_v2 = vld [vmem:[#allocation10 + $0xf0] ss:$8 sps:$4 sm:$0xff]   ;;  %v4229_v3 = vld [vmem:[#allocation10 + $0x104] ss:$8 sps:$4 sm:$0xff]  }
 0x21a   :  { %2438 = vmatprep.subr.bf16.mxu0 %v4151_v4  ;;  %2602 = vmatprep.subr.bf16.mxu1 %v4154_v5  ;;  %v4275_v4 = vld [vmem:[#allocation11 + $0x40] sm:$0xff]  }
 0x21b   :  { %v4276_v5 = vld [vmem:[#allocation11] sm:$0xff]  }
 0x21d   :  { %2439 = vmatpush1.bf16.msra.mxu0 %v4149_v6  ;;  %2603 = vmatpush1.bf16.msra.mxu1 %v4152_v7  ;;  %v4277_v6 = vld [vmem:[#allocation11 + $0x48] sm:$0xff]  }
 0x21e   :  { %2440 = vmatprep.subr.bf16.mxu0 %v4157_v11  ;;  %2604 = vmatprep.subr.bf16.mxu1 %v4160_v12  ;;  %v4278_v7 = vld [vmem:[#allocation11 + $0x8] sm:$0xff]   ;;  %v4279_v11 = vld [vmem:[#allocation11 + $0x50] sm:$0xff]  }
 0x21f   :  { %v4280_v12 = vld [vmem:[#allocation11 + $0x10] sm:$0xff]  }
 0x221   :  { %2441 = vmatpush1.bf16.msra.mxu0 %v4155_v14  ;;  %2605 = vmatpush1.bf16.msra.mxu1 %v4158_v15  ;;  %v4282_v14 = vld [vmem:[#allocation11 + $0x18] sm:$0xff]   ;;  %v4283_v15 = vld [vmem:[#allocation11 + $0x60] sm:$0xff]  }
 0x222   :  { %2442 = vmatprep.subr.bf16.mxu0 %v4163_v31  ;;  %2606 = vmatprep.subr.bf16.mxu1 %v4166_v49  ;;  %v4284_v31 = vld [vmem:[#allocation11 + $0x20] sm:$0xff]   ;;  %v4285_v49 = vld [vmem:[#allocation11 + $0x68] sm:$0xff]  }
 0x225   :  { %2443 = vmatpush1.bf16.msra.mxu0 %v4161_v17  ;;  %2607 = vmatpush1.bf16.msra.mxu1 %v4164_v18  ;;  %v4655_v17 = vld [vmem:[%s4694_s4] sm:$0xf] }
 0x226   :  { %2444 = vmatprep.subr.bf16.mxu0 %v4169_v19  ;;  %2608 = vmatprep.subr.bf16.mxu1 %v4172_v20  ;;  %v996_v18 = vrot.slane %v4655_v17, %v4610_v9  ;;  %v1000_v19 = vrot.slane %v4655_v17, %v4615_v0  ;;  %v1008_v20 = vrot.slane %v4655_v17, %v193_v48 }
 0x229   :  { %2445 = vmatpush1.bf16.msra.mxu0 %v4167_v22  ;;  %2609 = vmatpush1.bf16.msra.mxu1 %v4170_v23 }
 0x22a   :  { %2446 = vmatprep.subr.bf16.mxu0 %v4175_v24  ;;  %2610 = vmatprep.subr.bf16.mxu1 %v4178_v25 }
 0x22d   :  { %2447 = vmatpush1.bf16.msra.mxu0 %v4173_v10  ;;  %2611 = vmatpush1.bf16.msra.mxu1 %v4176_v28 }
 0x22e   :  { %3033 = vmatprep.subr.bf16.mxu0 %v4181_v29  ;;  %3723 = vmatprep.subr.bf16.mxu1 %v4275_v4  ;;  %v4263_v4 = vld [vmem:[#allocation10 + $0x1c0] ss:$8 sps:$4 sm:$0xff]  }
 0x230   :  { %2449 = vmatmul.mubr.bf16.vlgmr.msra.gmra.mrb[4].mxu0 %v733_v32  ;;  %2613 = vmatmul.mubr.bf16.vlgmr.msra.gmra.mrb[12].mxu1 %v733_v32 }
 0x231   :  { %3034 = vmatpush1.bf16.msra.mxu0 %v4179_v46  ;;  %3724 = vmatpush3.bf16.msra.mxu1 %v4276_v5  ;;  %v4268_v5 = vld [vmem:[#allocation10 + $0x1d4] ss:$8 sps:$4 sm:$0xff]  }
 0x232   :  { %3035 = vmatprep.subr.bf16.mxu0 %v4184_v33  ;;  %3725 = vmatprep.subr.bf16.mxu1 %v4277_v6  ;;  %v1004_v6 = vrot.slane %v4655_v17, %v189_v27  ;;  %v4287_v27 = vld [vmem:[#allocation11 + $0x70] sm:$0xff]   ;;  %v4289_v17 = vld [vmem:[#allocation11 + $0x78] sm:$0xff]  }
 0x235   :  { %3036 = vmatpush1.bf16.msra.mxu0 %v4182_v35  ;;  %3726 = vmatpush3.bf16.msra.mxu1 %v4278_v7  ;;  %v4266_v7 = vld [vmem:[#allocation10 + $0x1d0] ss:$8 sps:$4 sm:$0xff]  }
 0x236   :  { %3037 = vmatprep.subr.bf16.mxu0 %v4187_v36  ;;  %3727 = vmatprep.subr.bf16.mxu1 %v4279_v11  ;;  %v4271_v11 = vld [vmem:[#allocation10 + $0x1e4] ss:$8 sps:$4 sm:$0xff]  }
 0x239   :  { %3038 = vmatpush1.bf16.msra.mxu0 %v4185_v37  ;;  %3728 = vmatpush3.bf16.msra.mxu1 %v4280_v12 }
 0x23a   :  { %3039 = vmatprep.subr.bf16.mxu0 %v4190_v38  ;;  %3729 = vmatprep.subr.bf16.mxu1 %v4281_v13  ;;  %v4269_v13 = vld [vmem:[#allocation10 + $0x1e0] ss:$8 sps:$4 sm:$0xff]  }
 0x23d   :  { %3040 = vmatpush1.bf16.msra.mxu0 %v4188_v39  ;;  %3730 = vmatpush3.bf16.msra.mxu1 %v4282_v14  ;;  %v4227_v39 = vld [vmem:[#allocation10 + $0x100] ss:$8 sps:$4 sm:$0xff]   ;;  %v4274_v14 = vld [vmem:[#allocation10 + $0x1f4] ss:$8 sps:$4 sm:$0xff]  }
 0x23e   :  { %3041 = vmatprep.subr.bf16.mxu0 %v4193_v40  ;;  %3731 = vmatprep.subr.bf16.mxu1 %v4283_v15 }
 0x241   :  { %3042 = vmatpush1.bf16.msra.mxu0 %v4191_v41  ;;  %3732 = vmatpush3.bf16.msra.mxu1 %v4284_v31  ;;  %v4232_v41 = vld [vmem:[#allocation10 + $0x114] ss:$8 sps:$4 sm:$0xff]   ;;  %v4272_v31 = vld [vmem:[#allocation10 + $0x1f0] ss:$8 sps:$4 sm:$0xff]  }
 0x242   :  { %3043 = vmatprep.subr.bf16.mxu0 %v4196_v42  ;;  %3733 = vmatprep.subr.bf16.mxu1 %v4285_v49 }
 0x245   :  { %3044 = vmatpush1.bf16.msra.mxu0 %v4194_v43  ;;  %3734 = vmatpush3.bf16.msra.mxu1 %v4286_v16  ;;  %v4230_v43 = vld [vmem:[#allocation10 + $0x110] ss:$8 sps:$4 sm:$0xff]  }
 0x246   :  { %3045 = vmatprep.subr.bf16.mxu0 %v4199_v1  ;;  %v4235_v1 = vld [vmem:[#allocation10 + $0x124] ss:$8 sps:$4 sm:$0xff]   ;;  %v4288_v16 = vld [vmem:[#allocation11 + $0x30] sm:$0xff]   ;;  %3735 = vmatprep.subr.bf16.mxu1 %v4287_v27 }
 0x249   :  { %3046 = vmatpush1.bf16.msra.mxu0 %v4197_v44  ;;  %v4233_v44 = vld [vmem:[#allocation10 + $0x120] ss:$8 sps:$4 sm:$0xff]   ;;  %3736 = vmatpush3.bf16.msra.mxu1 %v4288_v16 }
 0x24a   :  { %3047 = vmatprep.subr.bf16.mxu0 %v4202_v45  ;;  %v4238_v45 = vld [vmem:[#allocation10 + $0x134] ss:$8 sps:$4 sm:$0xff]   ;;  %3737 = vmatprep.subr.bf16.mxu1 %v4289_v17 }
 0x24d   :  { %3048 = vmatpush1.bf16.msra.mxu0 %v4200_v47  ;;  %v4236_v47 = vld [vmem:[#allocation10 + $0x130] ss:$8 sps:$4 sm:$0xff]  }
 0x24e   :  { %3049 = vmatprep.subr.bf16.mxu0 %v4205_v50  ;;  %v4241_v50 = vld [vmem:[#allocation10 + $0x144] ss:$8 sps:$4 sm:$0xff]  }
 0x251   :  { %3050 = vmatpush1.bf16.msra.mxu0 %v4203_v51  ;;  %v4239_v51 = vld [vmem:[#allocation10 + $0x140] ss:$8 sps:$4 sm:$0xff]  }
 0x252   :  { %3051 = vmatprep.subr.bf16.mxu0 %v4208_v52  ;;  %v4244_v52 = vld [vmem:[#allocation10 + $0x154] ss:$8 sps:$4 sm:$0xff]  }
 0x255   :  { %3052 = vmatpush1.bf16.msra.mxu0 %v4206_v34  ;;  %v4242_v34 = vld [vmem:[#allocation10 + $0x150] ss:$8 sps:$4 sm:$0xff]  }
 0x256   :  { %3053 = vmatprep.subr.bf16.mxu0 %v4211_v53  ;;  %v4247_v53 = vld [vmem:[#allocation10 + $0x164] ss:$8 sps:$4 sm:$0xff]  }
 0x259   :  { %3054 = vmatpush1.bf16.msra.mxu0 %v4209_v54  ;;  %v4245_v54 = vld [vmem:[#allocation10 + $0x160] ss:$8 sps:$4 sm:$0xff]  }
 0x25a   :  { %3055 = vmatprep.subr.bf16.mxu0 %v4214_v55  ;;  %v4250_v55 = vld [vmem:[#allocation10 + $0x174] ss:$8 sps:$4 sm:$0xff]  }
 0x25d   :  { %3056 = vmatpush1.bf16.msra.mxu0 %v4212_v56  ;;  %v4248_v56 = vld [vmem:[#allocation10 + $0x170] ss:$8 sps:$4 sm:$0xff]  }
 0x25e   :  { %3057 = vmatprep.subr.bf16.mxu0 %v4217_v57  ;;  %v4253_v57 = vld [vmem:[#allocation10 + $0x184] ss:$8 sps:$4 sm:$0xff]  }
 0x261   :  { %3058 = vmatpush1.bf16.msra.mxu0 %v4215_v58  ;;  %v4251_v58 = vld [vmem:[#allocation10 + $0x180] ss:$8 sps:$4 sm:$0xff]  }
 0x262   :  { %3059 = vmatprep.subr.bf16.mxu0 %v4220_v59  ;;  %v4256_v59 = vld [vmem:[#allocation10 + $0x194] ss:$8 sps:$4 sm:$0xff]  }
 0x265   :  { %3060 = vmatpush1.bf16.msra.mxu0 %v4218_v60  ;;  %v4254_v60 = vld [vmem:[#allocation10 + $0x190] ss:$8 sps:$4 sm:$0xff]  }
 0x266   :  { %3061 = vmatprep.subr.bf16.mxu0 %v4223_v61  ;;  %v4259_v61 = vld [vmem:[#allocation10 + $0x1a4] ss:$8 sps:$4 sm:$0xff]  }
 0x269   :  { %3062 = vmatpush1.bf16.msra.mxu0 %v4221_v62  ;;  %v4257_v62 = vld [vmem:[#allocation10 + $0x1a0] ss:$8 sps:$4 sm:$0xff]  }
 0x26a   :  { %3063 = vmatprep.subr.bf16.mxu0 %v4226_v63  ;;  %v4262_v63 = vld [vmem:[#allocation10 + $0x1b4] ss:$8 sps:$4 sm:$0xff]  }
 0x26d   :  { %3064 = vmatpush1.bf16.msra.mxu0 %v4224_v2  ;;  %v4260_v2 = vld [vmem:[#allocation10 + $0x1b0] ss:$8 sps:$4 sm:$0xff]  }
 0x26e   :  { %3074 = vmatprep.subr.bf16.mxu0 %v4229_v3  ;;  %v4265_v3 = vld [vmem:[#allocation10 + $0x1c4] ss:$8 sps:$4 sm:$0xff]  }
 0x303   :  { %v2450_v21 = vpop.f32.mrb[4].mxu0  ;;  %v4664_v22 = vpop.f32.mrb[12].mxu1 }
 0x304   :  { %v3745_v23 = vadd.f32 %v2450_v21, %v996_v18  ;;  %v2452_v24 = vpop.f32.mrb[5].mxu0  ;;  %v2616_v25 = vpop.f32.mrb[13].mxu1  ;;  %v3747_v12 = vadd.f32 %v4664_v22, %v1004_v6  ;;  %v4290_v18 = vld [vmem:[#allocation11 + $0x38] sm:$0xff]  }
 0x305   :  { %v3746_v26 = vadd.f32 %v2452_v24, %v1000_v19  ;;  %v3748_v10 = vadd.f32 %v2616_v25, %v1008_v20  ;;  %v2454_v28 = vpop.f32.mrb[6].mxu0  ;;  %v2618_v29 = vpop.f32.mrb[14].mxu1  ;;  %3738 = vmatpush3.bf16.msra.mxu1 %v4290_v18  ;;  %v2701_v19 = vld [vmem:[%s4696_s6] sm:$0x3] }
 0x306   :  { %vm2621_vm8 = vcmp.gt.f32.partialorder %v3745_v23, 0.0  ;;  %v2625_v30 = vmul.f32 0.2, %v3745_v23  ;;  %v2455_v35 = vpop.f32.mrb[7].mxu0  ;;  %v2619_v36 = vpop.f32.mrb[15].mxu1  ;;  %vm2623_vm11 = vcmp.gt.f32.partialorder %v3747_v12, 0.0  ;;  %v2706_v20 = vrot.slane %v2701_v19, %v4610_v9 }
 0x307   :  { %vm2622_vm9 = vcmp.gt.f32.partialorder %v3746_v26, 0.0  ;;  %v2626_v46 = vmul.f32 0.2, %v3746_v26  ;;  %vm2624_vm10 = vcmp.gt.f32.partialorder %v3748_v10, 0.0  ;;  %v2628_v32 = vmul.f32 0.2, %v3748_v10 }
 0x308   :  { %v2629_v33 = vsel %vm2621_vm8, %v3745_v23, %v2625_v30  ;;  %v2627_v15 = vmul.f32 0.2, %v3747_v12  ;;  %v2710_v21 = vrot.slane %v2701_v19, %v4615_v0  ;;  %v3706_v9 = vld [vmem:[%s4698_s8] ss:$0 sm:$0xff] }
 0x309   :  { %v2630_v48 = vsel %vm2622_vm9, %v3746_v26, %v2626_v46  ;;  %v2632_v37 = vsel %vm2624_vm10, %v3748_v10, %v2628_v32  ;;  %v2633_v40 = vpack.c.bf16 %v2629_v33, %v2629_v33 }
 0x30a   :  { %v2634_v38 = vpack.c.bf16 %v2630_v48, %v2630_v48  ;;  %v2636_v42 = vpack.c.bf16 %v2632_v37, %v2632_v37  ;;  %v2631_v49 = vsel %vm2623_vm11, %v3747_v12, %v2627_v15 }
 0x30b   :  { %v2635_v8 = vpack.c.bf16 %v2631_v49, %v2631_v49 }
 0x30c   :  { %3065 = vmatprep.mubr.bf16.mxu0 %v2634_v38 }
 0x30d   :  { %3066 = vmatmul.mubr.bf16.vlgmr.msra.gmra.mrb[8].mxu0 %v2633_v40 }
 0x30e   :  { %3075 = vmatpush1.bf16.msra.mxu0 %v4227_v39  ;;  %3106 = vmatprep.mubr.bf16.mxu0 %v2636_v42 }
 0x30f   :  { %3076 = vmatprep.subr.bf16.mxu0 %v4232_v41 }
 0x312   :  { %3077 = vmatpush1.bf16.msra.mxu0 %v4230_v43 }
 0x313   :  { %3078 = vmatprep.subr.bf16.mxu0 %v4235_v1 }
 0x316   :  { %3079 = vmatpush1.bf16.msra.mxu0 %v4233_v44 }
 0x317   :  { %3080 = vmatprep.subr.bf16.mxu0 %v4238_v45 }
 0x31a   :  { %3081 = vmatpush1.bf16.msra.mxu0 %v4236_v47 }
 0x31b   :  { %3082 = vmatprep.subr.bf16.mxu0 %v4241_v50 }
 0x31e   :  { %3083 = vmatpush1.bf16.msra.mxu0 %v4239_v51 }
 0x31f   :  { %3084 = vmatprep.subr.bf16.mxu0 %v4244_v52 }
 0x322   :  { %3085 = vmatpush1.bf16.msra.mxu0 %v4242_v34 }
 0x323   :  { %3086 = vmatprep.subr.bf16.mxu0 %v4247_v53 }
 0x326   :  { %3087 = vmatpush1.bf16.msra.mxu0 %v4245_v54 }
 0x327   :  { %3088 = vmatprep.subr.bf16.mxu0 %v4250_v55 }
 0x32a   :  { %3089 = vmatpush1.bf16.msra.mxu0 %v4248_v56 }
 0x32b   :  { %3090 = vmatprep.subr.bf16.mxu0 %v4253_v57 }
 0x32e   :  { %3091 = vmatpush1.bf16.msra.mxu0 %v4251_v58 }
 0x32f   :  { %3092 = vmatprep.subr.bf16.mxu0 %v4256_v59 }
 0x332   :  { %3093 = vmatpush1.bf16.msra.mxu0 %v4254_v60 }
 0x333   :  { %3094 = vmatprep.subr.bf16.mxu0 %v4259_v61 }
 0x336   :  { %3095 = vmatpush1.bf16.msra.mxu0 %v4257_v62 }
 0x337   :  { %3096 = vmatprep.subr.bf16.mxu0 %v4262_v63 }
 0x33a   :  { %3097 = vmatpush1.bf16.msra.mxu0 %v4260_v2 }
 0x33b   :  { %3098 = vmatprep.subr.bf16.mxu0 %v4265_v3 }
 0x33e   :  { %3099 = vmatpush1.bf16.msra.mxu0 %v4263_v4 }
 0x33f   :  { %3100 = vmatprep.subr.bf16.mxu0 %v4268_v5 }
 0x342   :  { %3101 = vmatpush1.bf16.msra.mxu0 %v4266_v7 }
 0x343   :  { %3102 = vmatprep.subr.bf16.mxu0 %v4271_v11 }
 0x346   :  { %3103 = vmatpush1.bf16.msra.mxu0 %v4269_v13 }
 0x347   :  { %3104 = vmatprep.subr.bf16.mxu0 %v4274_v14 }
 0x34a   :  { %3105 = vmatpush1.bf16.msra.mxu0 %v4272_v31 }
 0x34d   :  { %3107 = vmatmul.mubr.bf16.vlgmr.msra.gmra.mrb[8].mxu0 %v2635_v8 }
 0x420   :  { %v3108_v22 = vpop.f32.mrb[8].mxu0 }
 0x421   :  { %v3749_v23 = vadd.f32 %v3108_v22, %v2706_v20  ;;  %v3110_v24 = vpop.f32.mrb[9].mxu0 }
 0x422   :  { %v3750_v25 = vadd.f32 %v3110_v24, %v2710_v21  ;;  %v3112_v26 = vpop.f32.mrb[10].mxu0 }
 0x423   :  { %vm3115_vm12 = vcmp.gt.f32.partialorder %v3749_v23, 0.0  ;;  %v3117_v10 = vmul.f32 0.2, %v3749_v23  ;;  %v3113_v28 = vpop.f32.mrb[11].mxu0 }
 0x424   :  { %vm3116_vm13 = vcmp.gt.f32.partialorder %v3750_v25, 0.0  ;;  %v3118_v29 = vmul.f32 0.2, %v3750_v25 }
 0x425   :  { %v3119_v30 = vsel %vm3115_vm12, %v3749_v23, %v3117_v10 }
 0x426   :  { %v3120_v46 = vsel %vm3116_vm13, %v3750_v25, %v3118_v29  ;;  %v3121_v33 = vpack.c.bf16 %v3119_v30, %v3119_v30 }
 0x427   :  { %v3122_v32 = vpack.c.bf16 %v3120_v46, %v3120_v46 }
 0x429   :  { %3290 = vmatprep.mubr.bf16.mxu1 %v3122_v32 }
 0x42a   :  { %3291 = vmatmul.mubr.bf16.vlgmr.msra.gmra.mrb[16].mxu1 %v3121_v33 }
 0x4fd   :  { %v3739_v35 = vpop.f32.mrb[16].mxu1 }
 0x4fe   :  { %v3740_v0 = vpop.f32.mrb[17].mxu1 }
 0x4ff   :  { %v3741_v36 = vadd.f32 %v3740_v0, %v3739_v35  ;;  %v3742_v48 = vpop.f32.mrb[18].mxu1 }
 0x500   :  { %v3743_v37 = vpop.f32.mrb[19].mxu1 }
 0x501   :  { %v3293_v38 = vadd.f32 %v3741_v36, %v3706_v9 }
 0x503   :  { %v3298_v39 = vsub.f32 0.0, %v3293_v38 }
 0x505   :  { %v3299_v40 = vmul.f32 1.442695, %v3298_v39 }
 0x507   :  { %4291 = vpow2.f32 %v3299_v40 }
 0x511   :  { %v4292_v41 = vpop.eup %4291 }
 0x512   :  { %v3301_v42 = vadd.f32 1.0, %v4292_v41 }
 0x514   :  { %4293 = vrcp.f32 %v3301_v42 }
 0x51e   :  { %v4294_v43 = vpop.eup %4293 }
 0x51f   :  { %3303 = vst [vmem:[#allocation13] sm:$0xff] %v4294_v43 }
 0x520   :  { %4438 = shalt.err (!%p4435_p10)
}
 0x521   :  { %s4439_s26 = scalar_lea.hbm %s4699_s9, 128 }
 0x522   :  { %p4440_p11 = scmp.ne.s32.totalorder %s4699_s9, %s4439_s26  ;;  %p4443_p12 = scmp.lt.u32.totalorder %s4439_s26, %s4699_s9 }
 0x524   :  { %p4445_p13 = pnand %p4443_p12, %p4440_p11 }
 0x526   :  { %4448 = shalt.err (!%p4445_p13)
}
 0x527   :  { %3313 = dma.vmem_to_hbm [thread:$0]  %s3311_s22, 128, %s4699_s9, [#allocation4]  }
 0x528   :  { %4457 = dma.done.wait [#allocation4], 128  }
 0x529   :  { %4458 = vsyncadd [#allocation4], 4294967168 }
 0x52a   :  { %3317 = vsyncpa [#allocation3], 1 }
 0x52b   :  { %3318 = vsyncpa [#allocation6], 1 }
 0x52c   :  { %3319 = vsyncpa [#allocation9], 1 }
 0x52d   :  { %3320 = vsyncpa [#allocation12], 1 }
 0x52e   :  { %3321 = vsyncpa [#allocation4], 1 }

</bundles_post_ra>
